<compile_context>
chip_gen: v7x
topology: tpu7x:2x2x1
jax: 0.10.0
libtpu: 0.0.40
codegen_flags: <defaults>
</compile_context>

<pallas_src>
import functools
import math

import jax
import jax.numpy as jnp
from jax.experimental import pallas as pl
from jax.experimental.pallas import tpu as pltpu

EPS = 1e-6  # nn.LayerNorm(dim, eps=1e-6) inside the ViT blocks


def _vmem_limit_bytes():
    """Generation-aware scoped-VMEM limit (v7x has 64 MiB/TC vs 128 MiB)."""
    cap = 64 * 1024 * 1024
    try:
        info = pltpu.get_tpu_info()
        c = getattr(info, "vmem_capacity_bytes", None)
        if c:
            cap = int(c)
    except Exception:
        pass
    return int(0.7 * cap)


# ----------------------------- kernel helpers ------------------------------

def _layernorm(x, gamma, beta):
    mu = jnp.mean(x, axis=-1, keepdims=True)
    xc = x - mu
    var = jnp.mean(xc * xc, axis=-1, keepdims=True)
    inv = jax.lax.rsqrt(var + EPS)
    return xc * inv * gamma + beta


def _gelu(x):
    # tanh approximation of GELU (stats kept in f32)
    # TODO(synk): switch to exact erf GELU if the reference backbone uses nn.GELU.
    c = math.sqrt(2.0 / math.pi)
    return 0.5 * x * (1.0 + jnp.tanh(c * (x + 0.044715 * x * x * x)))


# ------------------------------ fused kernel --------------------------------

def vit_kernel(num_heads,
               patches_ref, pw_ref, pos_ref,
               g1_ref, be1_ref, wqkv_ref, bqkv_ref, wo_ref, bo_ref,
               g2_ref, be2_ref, w1_ref, b1_ref, w2_ref, b2_ref,
               o_ref, res_ref):
    l = pl.program_id(1)

    @pl.when(l == 0)
    def _():
        # Patch-embedding matmul fused with positional embedding (Conv2d bias
        # pre-folded into pos). Runs once per image; result stays in VMEM.
        res_ref[...] = jnp.dot(patches_ref[0], pw_ref[...],
                               preferred_element_type=jnp.float32) + pos_ref[...]

    x = res_ref[...]                          # (N, D) f32 residual stream
    n, d = x.shape
    hd = d // num_heads

    # ---- multi-head self-attention (pre-norm) ----
    h = _layernorm(x, g1_ref[0], be1_ref[0]).astype(jnp.bfloat16)

    # Fused QKV projection: one wide bf16 MXU matmul, f32 accumulation.
    # The 1/sqrt(hd) attention scale is pre-folded into the q columns.
    qkv = jnp.dot(h, wqkv_ref[0], preferred_element_type=jnp.float32) + bqkv_ref[0]
    q = qkv[:, :d].astype(jnp.bfloat16)
    k = qkv[:, d:2 * d].astype(jnp.bfloat16)
    v = qkv[:, 2 * d:].astype(jnp.bfloat16)

    # Heads to the leading (batch) dim in bf16: (N, H, hd) -> (H, N, hd).
    q3 = pltpu.einshape("nhd->hnd", q.reshape(n, num_heads, hd))
    k3 = pltpu.einshape("nhd->hnd", k.reshape(n, num_heads, hd))
    v3 = pltpu.einshape("nhd->hnd", v.reshape(n, num_heads, hd))

    # Batched (per-head) scores + softmax, stats in f32.
    s = jnp.einsum("hqd,hkd->hqk", q3, k3, preferred_element_type=jnp.float32)
    s = s - jnp.max(s, axis=-1, keepdims=True)
    e = jnp.exp(s)
    p = e * pl.reciprocal(jnp.sum(e, axis=-1, keepdims=True), approx=True)

    ctx = jnp.einsum("hqk,hkd->hqd", p.astype(jnp.bfloat16), v3,
                     preferred_element_type=jnp.float32)           # (H, N, hd)
    ctx = pltpu.einshape("hnd->nhd", ctx.astype(jnp.bfloat16)).reshape(n, d)

    attn = jnp.dot(ctx, wo_ref[0], preferred_element_type=jnp.float32) + bo_ref[0]
    x = x + attn

    # ---- position-wise feed-forward (pre-norm) ----
    h2 = _layernorm(x, g2_ref[0], be2_ref[0]).astype(jnp.bfloat16)
    f = jnp.dot(h2, w1_ref[0], preferred_element_type=jnp.float32) + b1_ref[0]
    f = _gelu(f)
    f = jnp.dot(f.astype(jnp.bfloat16), w2_ref[0],
                preferred_element_type=jnp.float32) + b2_ref[0]
    x = x + f

    res_ref[...] = x

    @pl.when(l == pl.num_programs(1) - 1)
    def _():
        o_ref[0] = x


# ------------------------------ wrapper --------------------------------------

_BLOCK_PARAM_ORDER = [
    "g1", "be1", "wqkv", "bqkv", "wo", "bo",
    "g2", "be2", "w1", "b1", "w2", "b2",
]


def vit_backbone(x_nchw, params, patch, num_heads):
    """Conv2d patch embedding + positional embedding + transformer (no final LN/fc)."""
    B, C, H, W = x_nchw.shape
    gh, gw = H // patch, W // patch
    N = gh * gw
    # NCHW -> (B, N, C*P*P) in bf16 (halves the out-of-kernel HBM round trip),
    # flattening each patch in (c, i, j) order so it matches Conv2d weight
    # layout (D, C, P, P) reshaped to (C*P*P, D).
    xb = x_nchw.astype(jnp.bfloat16)
    patches = xb.reshape(B, C, gh, patch, gw, patch)
    patches = patches.transpose(0, 2, 4, 1, 3, 5).reshape(B, N, C * patch * patch)

    pw = params["patch_w"]
    pos = params["pos"]
    CPP, D = pw.shape
    L = params["wqkv"].shape[0]
    FF = params["w1"].shape[2]

    kernel = functools.partial(vit_kernel, num_heads)

    def img_spec(shape):    # per-image, invariant in l (fetched once per b)
        return pl.BlockSpec(shape, lambda b, l: (b, 0, 0))

    def const_spec(shape):  # grid-invariant
        return pl.BlockSpec(shape, lambda b, l: (0, 0))

    def layer_spec(shape):  # per-layer stacked weights, indexed by l
        return pl.BlockSpec((1,) + shape, lambda b, l: (l, 0, 0))

    in_specs = [
        img_spec((1, N, CPP)),     # patches
        const_spec((CPP, D)),      # patch embed weight
        const_spec((N, D)),        # pos (+ folded conv bias)
        layer_spec((1, D)),        # g1
        layer_spec((1, D)),        # be1
        layer_spec((D, 3 * D)),    # wqkv
        layer_spec((1, 3 * D)),    # bqkv
        layer_spec((D, D)),        # wo
        layer_spec((1, D)),        # bo
        layer_spec((1, D)),        # g2
        layer_spec((1, D)),        # be2
        layer_spec((D, FF)),       # w1
        layer_spec((1, FF)),       # b1
        layer_spec((FF, D)),       # w2
        layer_spec((1, D)),        # b2
    ]
    args = [patches, pw, pos] + [params[name] for name in _BLOCK_PARAM_ORDER]

    return pl.pallas_call(
        kernel,
        out_shape=jax.ShapeDtypeStruct((B, N, D), jnp.float32),
        grid_spec=pltpu.PrefetchScalarGridSpec(
            num_scalar_prefetch=0,
            grid=(B, L),                    # B parallel (megacore), L carried
            in_specs=in_specs,
            out_specs=pl.BlockSpec((1, N, D), lambda b, l: (b, 0, 0)),
            scratch_shapes=[pltpu.VMEM((N, D), jnp.float32)],  # resident residual
        ),
        compiler_params=pltpu.CompilerParams(
            dimension_semantics=("parallel", "arbitrary"),
            vmem_limit_bytes=_vmem_limit_bytes()),
    )(*args)


# ------------------------------ param init ----------------------------------

def init_params(key, *, C, patch, N, D, FF, num_heads, num_layers):
    ks = jax.random.split(key, 3 + num_layers)
    scale = 0.05
    conv_w = scale * jax.random.normal(ks[0], (D, C, patch, patch), jnp.float32)
    patch_b = scale * jax.random.normal(ks[1], (1, D), jnp.float32)
    pos = scale * jax.random.normal(ks[2], (N, D), jnp.float32)
    params = {
        # Conv2d weight (D, C, P, P) -> matmul weight (C*P*P, D), bf16 for MXU.
        "patch_w": conv_w.reshape(D, C * patch * patch).T.astype(jnp.bfloat16),
        # Conv2d bias folded into the positional embedding (one fewer input/add).
        "pos": pos + patch_b,
    }
    hd = D // num_heads
    attn_scale = 1.0 / math.sqrt(hd)
    per_layer = {k: [] for k in _BLOCK_PARAM_ORDER}
    for li in range(num_layers):
        lk = jax.random.split(ks[3 + li], 6)
        # nn.Linear weights are (out, in); we store transposed (in, out).
        wq = scale * jax.random.normal(lk[0], (D, D), jnp.float32)
        wk = scale * jax.random.normal(lk[1], (D, D), jnp.float32)
        wv = scale * jax.random.normal(lk[2], (D, D), jnp.float32)
        bq = jnp.zeros((1, D), jnp.float32)
        bk = jnp.zeros((1, D), jnp.float32)
        bv = jnp.zeros((1, D), jnp.float32)
        per_layer["g1"].append(jnp.ones((1, D), jnp.float32))
        per_layer["be1"].append(jnp.zeros((1, D), jnp.float32))
        # Fused QKV; the 1/sqrt(hd) softmax scale is folded into q columns.
        per_layer["wqkv"].append(
            jnp.concatenate([wq * attn_scale, wk, wv], axis=1).astype(jnp.bfloat16))
        per_layer["bqkv"].append(jnp.concatenate([bq * attn_scale, bk, bv], axis=1))
        per_layer["wo"].append(
            (scale * jax.random.normal(lk[3], (D, D), jnp.float32)).astype(jnp.bfloat16))
        per_layer["bo"].append(jnp.zeros((1, D), jnp.float32))
        per_layer["g2"].append(jnp.ones((1, D), jnp.float32))
        per_layer["be2"].append(jnp.zeros((1, D), jnp.float32))
        per_layer["w1"].append(
            (scale * jax.random.normal(lk[4], (D, FF), jnp.float32)).astype(jnp.bfloat16))
        per_layer["b1"].append(jnp.zeros((1, FF), jnp.float32))
        per_layer["w2"].append(
            (scale * jax.random.normal(lk[5], (FF, D), jnp.float32)).astype(jnp.bfloat16))
        per_layer["b2"].append(jnp.zeros((1, D), jnp.float32))
    for k, v in per_layer.items():
        params[k] = jnp.stack(v, axis=0)   # leading L axis for the fused kernel
    return params


# ---------------------------------- main -------------------------------------

if __name__ == "__main__":
    # Small ViT-style config (real B_16 would be 224/16, D=768, 12 heads, 12 layers).
    B, C, IMG, PATCH = 2, 3, 32, 8
    D, HEADS, FF, LAYERS = 128, 4, 512, 2
    GH = IMG // PATCH
    N = GH * GH

    key = jax.random.PRNGKey(0)
    kx, kp = jax.random.split(key)
    x = jax.random.normal(kx, (B, C, IMG, IMG), jnp.float32)  # NCHW like PyTorch
    params = init_params(kp, C=C, patch=PATCH, N=N, D=D, FF=FF,
                         num_heads=HEADS, num_layers=LAYERS)

    out = vit_backbone(x, params, PATCH, HEADS)
    out = jax.block_until_ready(out)
    assert out.shape == (B, N, D), out.shape
    assert jnp.all(jnp.isfinite(out))
    print("KERNEL_OK")
</pallas_src>

<mosaic_0001>
module attributes {stable_mosaic.version = 11 : i64} {
  func.func @vit_kernel(%arg0: i32, %arg1: i32, %arg2: memref<1x16x192xbf16, #tpu.memory_space<vmem>>, %arg3: memref<192x128xbf16, #tpu.memory_space<vmem>>, %arg4: memref<16x128xf32, #tpu.memory_space<vmem>>, %arg5: memref<1x1x128xf32, #tpu.memory_space<vmem>>, %arg6: memref<1x1x128xf32, #tpu.memory_space<vmem>>, %arg7: memref<1x128x384xbf16, #tpu.memory_space<vmem>>, %arg8: memref<1x1x384xf32, #tpu.memory_space<vmem>>, %arg9: memref<1x128x128xbf16, #tpu.memory_space<vmem>>, %arg10: memref<1x1x128xf32, #tpu.memory_space<vmem>>, %arg11: memref<1x1x128xf32, #tpu.memory_space<vmem>>, %arg12: memref<1x1x128xf32, #tpu.memory_space<vmem>>, %arg13: memref<1x128x512xbf16, #tpu.memory_space<vmem>>, %arg14: memref<1x1x512xf32, #tpu.memory_space<vmem>>, %arg15: memref<1x512x128xbf16, #tpu.memory_space<vmem>>, %arg16: memref<1x1x128xf32, #tpu.memory_space<vmem>>, %arg17: memref<1x16x128xf32, #tpu.memory_space<vmem>>, %arg18: memref<16x128xf32, #tpu.memory_space<vmem>>) attributes {dimension_semantics = [#tpu.dimension_semantics<parallel>, #tpu.dimension_semantics<arbitrary>], iteration_bounds = array<i64: 2, 2>, scalar_prefetch = 0 : i64, scratch_operands = 1 : i64, tpu.core_type = #tpu.core_type<tc>, window_params = [{transform_indices = @transform_0, window_bounds = array<i64: 1, 16, 192>}, {pipeline_mode = #tpu.pipeline_mode<synchronous>, transform_indices = @transform_1, window_bounds = array<i64: 192, 128>}, {pipeline_mode = #tpu.pipeline_mode<synchronous>, transform_indices = @transform_2, window_bounds = array<i64: 16, 128>}, {transform_indices = @transform_3, window_bounds = array<i64: 1, 1, 128>}, {transform_indices = @transform_4, window_bounds = array<i64: 1, 1, 128>}, {transform_indices = @transform_5, window_bounds = array<i64: 1, 128, 384>}, {transform_indices = @transform_6, window_bounds = array<i64: 1, 1, 384>}, {transform_indices = @transform_7, window_bounds = array<i64: 1, 128, 128>}, {transform_indices = @transform_8, window_bounds = array<i64: 1, 1, 128>}, {transform_indices = @transform_9, window_bounds = array<i64: 1, 1, 128>}, {transform_indices = @transform_10, window_bounds = array<i64: 1, 1, 128>}, {transform_indices = @transform_11, window_bounds = array<i64: 1, 128, 512>}, {transform_indices = @transform_12, window_bounds = array<i64: 1, 1, 512>}, {transform_indices = @transform_13, window_bounds = array<i64: 1, 512, 128>}, {transform_indices = @transform_14, window_bounds = array<i64: 1, 1, 128>}, {transform_indices = @transform_15, window_bounds = array<i64: 1, 16, 128>}]} {
    %c0_i32 = arith.constant 0 : i32
    %0 = arith.cmpi eq, %arg1, %c0_i32 : i32
    %1 = arith.extui %0 : i1 to i32
    %c0_i32_0 = arith.constant 0 : i32
    %2 = arith.cmpi ne, %1, %c0_i32_0 : i32
    scf.if %2 {
      %c0_62 = arith.constant 0 : index
      %c0_63 = arith.constant 0 : index
      %c0_64 = arith.constant 0 : index
      %130 = vector.load %arg2[%c0_62, %c0_63, %c0_64] : memref<1x16x192xbf16, #tpu.memory_space<vmem>>, vector<1x16x192xbf16>
      %131 = vector.shape_cast %130 : vector<1x16x192xbf16> to vector<16x192xbf16>
      %c0_65 = arith.constant 0 : index
      %c0_66 = arith.constant 0 : index
      %132 = vector.load %arg3[%c0_65, %c0_66] : memref<192x128xbf16, #tpu.memory_space<vmem>>, vector<192x128xbf16>
      %cst_67 = arith.constant dense<0.000000e+00> : vector<16x128xf32>
      %133 = tpu.matmul %131, %132, %cst_67 {dimension_numbers = #tpu.dot_dimension_numbers<[1], [0], [0], [1], [0, 0, 1, 1], [], []>} : vector<16x192xbf16>, vector<192x128xbf16>, vector<16x128xf32> -> vector<16x128xf32>
      %c0_68 = arith.constant 0 : index
      %c0_69 = arith.constant 0 : index
      %134 = vector.load %arg4[%c0_68, %c0_69] : memref<16x128xf32, #tpu.memory_space<vmem>>, vector<16x128xf32>
      %135 = arith.addf %133, %134 : vector<16x128xf32>
      %c0_70 = arith.constant 0 : index
      %c0_71 = arith.constant 0 : index
      %136 = vector.load %arg18[%c0_70, %c0_71] : memref<16x128xf32, #tpu.memory_space<vmem>>, vector<16x128xf32>
      tpu.vector_store %arg18[%c0_70, %c0_71], %135 {strides = array<i32>} : memref<16x128xf32, #tpu.memory_space<vmem>>, vector<16x128xf32>,
    } else {
    }
    %c0 = arith.constant 0 : index
    %c0_1 = arith.constant 0 : index
    %3 = vector.load %arg18[%c0, %c0_1] : memref<16x128xf32, #tpu.memory_space<vmem>>, vector<16x128xf32>
    %c0_2 = arith.constant 0 : index
    %c0_3 = arith.constant 0 : index
    %c0_4 = arith.constant 0 : index
    %4 = vector.load %arg5[%c0_2, %c0_3, %c0_4] : memref<1x1x128xf32, #tpu.memory_space<vmem>>, vector<1x1x128xf32>
    %5 = vector.shape_cast %4 : vector<1x1x128xf32> to vector<1x128xf32>
    %c0_5 = arith.constant 0 : index
    %c0_6 = arith.constant 0 : index
    %c0_7 = arith.constant 0 : index
    %6 = vector.load %arg6[%c0_5, %c0_6, %c0_7] : memref<1x1x128xf32, #tpu.memory_space<vmem>>, vector<1x1x128xf32>
    %7 = vector.shape_cast %6 : vector<1x1x128xf32> to vector<1x128xf32>
    %cst = arith.constant dense<0.000000e+00> : vector<16xf32>
    %8 = vector.multi_reduction <add>, %3, %cst [1] : vector<16x128xf32> to vector<16xf32>
    %9 = vector.shape_cast %8 : vector<16xf32> to vector<16x1xf32>
    %cst_8 = arith.constant 1.280000e+02 : f32
    %10 = vector.broadcast %cst_8 : f32 to vector<16x1xf32>
    %11 = arith.divf %9, %10 : vector<16x1xf32>
    %12 = vector.broadcast %11 : vector<16x1xf32> to vector<16x128xf32>
    %13 = arith.subf %3, %12 : vector<16x128xf32>
    %14 = arith.mulf %13, %13 : vector<16x128xf32>
    %cst_9 = arith.constant dense<0.000000e+00> : vector<16xf32>
    %15 = vector.multi_reduction <add>, %14, %cst_9 [1] : vector<16x128xf32> to vector<16xf32>
    %16 = vector.shape_cast %15 : vector<16xf32> to vector<16x1xf32>
    %cst_10 = arith.constant 1.280000e+02 : f32
    %17 = vector.broadcast %cst_10 : f32 to vector<16x1xf32>
    %18 = arith.divf %16, %17 : vector<16x1xf32>
    %cst_11 = arith.constant 9.99999997E-7 : f32
    %19 = vector.broadcast %cst_11 : f32 to vector<16x1xf32>
    %20 = arith.addf %18, %19 : vector<16x1xf32>
    %21 = math.rsqrt %20 : vector<16x1xf32>
    %22 = vector.broadcast %21 : vector<16x1xf32> to vector<16x128xf32>
    %23 = arith.mulf %13, %22 : vector<16x128xf32>
    %24 = vector.broadcast %5 : vector<1x128xf32> to vector<16x128xf32>
    %25 = arith.mulf %23, %24 : vector<16x128xf32>
    %26 = vector.broadcast %7 : vector<1x128xf32> to vector<16x128xf32>
    %27 = arith.addf %25, %26 : vector<16x128xf32>
    %28 = arith.truncf %27 : vector<16x128xf32> to vector<16x128xbf16>
    %c0_12 = arith.constant 0 : index
    %c0_13 = arith.constant 0 : index
    %c0_14 = arith.constant 0 : index
    %29 = vector.load %arg7[%c0_12, %c0_13, %c0_14] : memref<1x128x384xbf16, #tpu.memory_space<vmem>>, vector<1x128x384xbf16>
    %30 = vector.shape_cast %29 : vector<1x128x384xbf16> to vector<128x384xbf16>
    %cst_15 = arith.constant dense<0.000000e+00> : vector<16x384xf32>
    %31 = tpu.matmul %28, %30, %cst_15 {dimension_numbers = #tpu.dot_dimension_numbers<[1], [0], [0], [1], [0, 0, 1, 1], [], []>} : vector<16x128xbf16>, vector<128x384xbf16>, vector<16x384xf32> -> vector<16x384xf32>
    %c0_16 = arith.constant 0 : index
    %c0_17 = arith.constant 0 : index
    %c0_18 = arith.constant 0 : index
    %32 = vector.load %arg8[%c0_16, %c0_17, %c0_18] : memref<1x1x384xf32, #tpu.memory_space<vmem>>, vector<1x1x384xf32>
    %33 = vector.shape_cast %32 : vector<1x1x384xf32> to vector<1x384xf32>
    %34 = vector.broadcast %33 : vector<1x384xf32> to vector<16x384xf32>
    %35 = arith.addf %31, %34 : vector<16x384xf32>
    %36 = vector.extract_strided_slice %35 {offsets = [0, 0], sizes = [16, 128], strides = [1, 1]} : vector<16x384xf32> to vector<16x128xf32>
    %37 = arith.truncf %36 : vector<16x128xf32> to vector<16x128xbf16>
    %38 = vector.extract_strided_slice %35 {offsets = [0, 128], sizes = [16, 128], strides = [1, 1]} : vector<16x384xf32> to vector<16x128xf32>
    %39 = arith.truncf %38 : vector<16x128xf32> to vector<16x128xbf16>
    %40 = vector.extract_strided_slice %35 {offsets = [0, 256], sizes = [16, 128], strides = [1, 1]} : vector<16x384xf32> to vector<16x128xf32>
    %41 = arith.truncf %40 : vector<16x128xf32> to vector<16x128xbf16>
    %42 = vector.shape_cast %37 : vector<16x128xbf16> to vector<16x4x32xbf16>
    %43 = tpu.transpose %42, [1, 0, 2] : vector<16x4x32xbf16> -> vector<4x16x32xbf16>
    %44 = vector.shape_cast %39 : vector<16x128xbf16> to vector<16x4x32xbf16>
    %45 = tpu.transpose %44, [1, 0, 2] : vector<16x4x32xbf16> -> vector<4x16x32xbf16>
    %46 = vector.shape_cast %41 : vector<16x128xbf16> to vector<16x4x32xbf16>
    %47 = tpu.transpose %46, [1, 0, 2] : vector<16x4x32xbf16> -> vector<4x16x32xbf16>
    "tpu.trace_start"() <{level = 10 : i32, message = "hqd,hkd->hqk"}> : () -> ()
    %cst_19 = arith.constant dense<0.000000e+00> : vector<4x16x16xf32>
    %48 = tpu.matmul %43, %45, %cst_19 {dimension_numbers = #tpu.dot_dimension_numbers<[2], [2], [1], [1], [0, 0, 0, 1, 1, 1], [0], [0]>} : vector<4x16x32xbf16>, vector<4x16x32xbf16>, vector<4x16x16xf32> -> vector<4x16x16xf32>
    "tpu.trace_stop"() : () -> ()
    %cst_20 = arith.constant dense<0xFF800000> : vector<4x16xf32>
    %49 = vector.multi_reduction <maximumf>, %48, %cst_20 [2] : vector<4x16x16xf32> to vector<4x16xf32>
    %50 = vector.shape_cast %49 : vector<4x16xf32> to vector<4x16x1xf32>
    %51 = vector.broadcast %50 : vector<4x16x1xf32> to vector<4x16x16xf32>
    %52 = arith.subf %48, %51 : vector<4x16x16xf32>
    %53 = math.exp %52 : vector<4x16x16xf32>
    %cst_21 = arith.constant dense<0.000000e+00> : vector<4x16xf32>
    %54 = vector.multi_reduction <add>, %53, %cst_21 [2] : vector<4x16x16xf32> to vector<4x16xf32>
    %55 = vector.shape_cast %54 : vector<4x16xf32> to vector<4x16x1xf32>
    %56 = tpu.reciprocal %55 {approx = true} : vector<4x16x1xf32> -> vector<4x16x1xf32>
    %57 = vector.broadcast %56 : vector<4x16x1xf32> to vector<4x16x16xf32>
    %58 = arith.mulf %53, %57 : vector<4x16x16xf32>
    %59 = arith.truncf %58 : vector<4x16x16xf32> to vector<4x16x16xbf16>
    "tpu.trace_start"() <{level = 10 : i32, message = "hqk,hkd->hqd"}> : () -> ()
    %cst_22 = arith.constant dense<0.000000e+00> : vector<4x16x32xf32>
    %60 = tpu.matmul %59, %47, %cst_22 {dimension_numbers = #tpu.dot_dimension_numbers<[2], [1], [1], [2], [0, 0, 0, 1, 1, 2], [0], [0]>} : vector<4x16x16xbf16>, vector<4x16x32xbf16>, vector<4x16x32xf32> -> vector<4x16x32xf32>
    "tpu.trace_stop"() : () -> ()
    %61 = arith.truncf %60 : vector<4x16x32xf32> to vector<4x16x32xbf16>
    %62 = tpu.transpose %61, [1, 0, 2] : vector<4x16x32xbf16> -> vector<16x4x32xbf16>
    %63 = vector.shape_cast %62 : vector<16x4x32xbf16> to vector<16x128xbf16>
    %c0_23 = arith.constant 0 : index
    %c0_24 = arith.constant 0 : index
    %c0_25 = arith.constant 0 : index
    %64 = vector.load %arg9[%c0_23, %c0_24, %c0_25] : memref<1x128x128xbf16, #tpu.memory_space<vmem>>, vector<1x128x128xbf16>
    %65 = vector.shape_cast %64 : vector<1x128x128xbf16> to vector<128x128xbf16>
    %cst_26 = arith.constant dense<0.000000e+00> : vector<16x128xf32>
    %66 = tpu.matmul %63, %65, %cst_26 {dimension_numbers = #tpu.dot_dimension_numbers<[1], [0], [0], [1], [0, 0, 1, 1], [], []>} : vector<16x128xbf16>, vector<128x128xbf16>, vector<16x128xf32> -> vector<16x128xf32>
    %c0_27 = arith.constant 0 : index
    %c0_28 = arith.constant 0 : index
    %c0_29 = arith.constant 0 : index
    %67 = vector.load %arg10[%c0_27, %c0_28, %c0_29] : memref<1x1x128xf32, #tpu.memory_space<vmem>>, vector<1x1x128xf32>
    %68 = vector.shape_cast %67 : vector<1x1x128xf32> to vector<1x128xf32>
    %69 = vector.broadcast %68 : vector<1x128xf32> to vector<16x128xf32>
    %70 = arith.addf %66, %69 : vector<16x128xf32>
    %71 = arith.addf %3, %70 : vector<16x128xf32>
    %c0_30 = arith.constant 0 : index
    %c0_31 = arith.constant 0 : index
    %c0_32 = arith.constant 0 : index
    %72 = vector.load %arg11[%c0_30, %c0_31, %c0_32] : memref<1x1x128xf32, #tpu.memory_space<vmem>>, vector<1x1x128xf32>
    %73 = vector.shape_cast %72 : vector<1x1x128xf32> to vector<1x128xf32>
    %c0_33 = arith.constant 0 : index
    %c0_34 = arith.constant 0 : index
    %c0_35 = arith.constant 0 : index
    %74 = vector.load %arg12[%c0_33, %c0_34, %c0_35] : memref<1x1x128xf32, #tpu.memory_space<vmem>>, vector<1x1x128xf32>
    %75 = vector.shape_cast %74 : vector<1x1x128xf32> to vector<1x128xf32>
    %cst_36 = arith.constant dense<0.000000e+00> : vector<16xf32>
    %76 = vector.multi_reduction <add>, %71, %cst_36 [1] : vector<16x128xf32> to vector<16xf32>
    %77 = vector.shape_cast %76 : vector<16xf32> to vector<16x1xf32>
    %cst_37 = arith.constant 1.280000e+02 : f32
    %78 = vector.broadcast %cst_37 : f32 to vector<16x1xf32>
    %79 = arith.divf %77, %78 : vector<16x1xf32>
    %80 = vector.broadcast %79 : vector<16x1xf32> to vector<16x128xf32>
    %81 = arith.subf %71, %80 : vector<16x128xf32>
    %82 = arith.mulf %81, %81 : vector<16x128xf32>
    %cst_38 = arith.constant dense<0.000000e+00> : vector<16xf32>
    %83 = vector.multi_reduction <add>, %82, %cst_38 [1] : vector<16x128xf32> to vector<16xf32>
    %84 = vector.shape_cast %83 : vector<16xf32> to vector<16x1xf32>
    %cst_39 = arith.constant 1.280000e+02 : f32
    %85 = vector.broadcast %cst_39 : f32 to vector<16x1xf32>
    %86 = arith.divf %84, %85 : vector<16x1xf32>
    %cst_40 = arith.constant 9.99999997E-7 : f32
    %87 = vector.broadcast %cst_40 : f32 to vector<16x1xf32>
    %88 = arith.addf %86, %87 : vector<16x1xf32>
    %89 = math.rsqrt %88 : vector<16x1xf32>
    %90 = vector.broadcast %89 : vector<16x1xf32> to vector<16x128xf32>
    %91 = arith.mulf %81, %90 : vector<16x128xf32>
    %92 = vector.broadcast %73 : vector<1x128xf32> to vector<16x128xf32>
    %93 = arith.mulf %91, %92 : vector<16x128xf32>
    %94 = vector.broadcast %75 : vector<1x128xf32> to vector<16x128xf32>
    %95 = arith.addf %93, %94 : vector<16x128xf32>
    %96 = arith.truncf %95 : vector<16x128xf32> to vector<16x128xbf16>
    %c0_41 = arith.constant 0 : index
    %c0_42 = arith.constant 0 : index
    %c0_43 = arith.constant 0 : index
    %97 = vector.load %arg13[%c0_41, %c0_42, %c0_43] : memref<1x128x512xbf16, #tpu.memory_space<vmem>>, vector<1x128x512xbf16>
    %98 = vector.shape_cast %97 : vector<1x128x512xbf16> to vector<128x512xbf16>
    %cst_44 = arith.constant dense<0.000000e+00> : vector<16x512xf32>
    %99 = tpu.matmul %96, %98, %cst_44 {dimension_numbers = #tpu.dot_dimension_numbers<[1], [0], [0], [1], [0, 0, 1, 1], [], []>} : vector<16x128xbf16>, vector<128x512xbf16>, vector<16x512xf32> -> vector<16x512xf32>
    %c0_45 = arith.constant 0 : index
    %c0_46 = arith.constant 0 : index
    %c0_47 = arith.constant 0 : index
    %100 = vector.load %arg14[%c0_45, %c0_46, %c0_47] : memref<1x1x512xf32, #tpu.memory_space<vmem>>, vector<1x1x512xf32>
    %101 = vector.shape_cast %100 : vector<1x1x512xf32> to vector<1x512xf32>
    %102 = vector.broadcast %101 : vector<1x512xf32> to vector<16x512xf32>
    %103 = arith.addf %99, %102 : vector<16x512xf32>
    %cst_48 = arith.constant 5.000000e-01 : f32
    %104 = vector.broadcast %cst_48 : f32 to vector<16x512xf32>
    %105 = arith.mulf %104, %103 : vector<16x512xf32>
    %cst_49 = arith.constant 4.471500e-02 : f32
    %106 = vector.broadcast %cst_49 : f32 to vector<16x512xf32>
    %107 = arith.mulf %106, %103 : vector<16x512xf32>
    %108 = arith.mulf %107, %103 : vector<16x512xf32>
    %109 = arith.mulf %108, %103 : vector<16x512xf32>
    %110 = arith.addf %103, %109 : vector<16x512xf32>
    %cst_50 = arith.constant 0.797884583 : f32
    %111 = vector.broadcast %cst_50 : f32 to vector<16x512xf32>
    %112 = arith.mulf %111, %110 : vector<16x512xf32>
    %113 = math.tanh %112 : vector<16x512xf32>
    %cst_51 = arith.constant 1.000000e+00 : f32
    %114 = vector.broadcast %cst_51 : f32 to vector<16x512xf32>
    %115 = arith.addf %114, %113 : vector<16x512xf32>
    %116 = arith.mulf %105, %115 : vector<16x512xf32>
    %117 = arith.truncf %116 : vector<16x512xf32> to vector<16x512xbf16>
    %c0_52 = arith.constant 0 : index
    %c0_53 = arith.constant 0 : index
    %c0_54 = arith.constant 0 : index
    %118 = vector.load %arg15[%c0_52, %c0_53, %c0_54] : memref<1x512x128xbf16, #tpu.memory_space<vmem>>, vector<1x512x128xbf16>
    %119 = vector.shape_cast %118 : vector<1x512x128xbf16> to vector<512x128xbf16>
    %cst_55 = arith.constant dense<0.000000e+00> : vector<16x128xf32>
    %120 = tpu.matmul %117, %119, %cst_55 {dimension_numbers = #tpu.dot_dimension_numbers<[1], [0], [0], [1], [0, 0, 1, 1], [], []>} : vector<16x512xbf16>, vector<512x128xbf16>, vector<16x128xf32> -> vector<16x128xf32>
    %c0_56 = arith.constant 0 : index
    %c0_57 = arith.constant 0 : index
    %c0_58 = arith.constant 0 : index
    %121 = vector.load %arg16[%c0_56, %c0_57, %c0_58] : memref<1x1x128xf32, #tpu.memory_space<vmem>>, vector<1x1x128xf32>
    %122 = vector.shape_cast %121 : vector<1x1x128xf32> to vector<1x128xf32>
    %123 = vector.broadcast %122 : vector<1x128xf32> to vector<16x128xf32>
    %124 = arith.addf %120, %123 : vector<16x128xf32>
    %125 = arith.addf %71, %124 : vector<16x128xf32>
    %c0_59 = arith.constant 0 : index
    %c0_60 = arith.constant 0 : index
    %126 = vector.load %arg18[%c0_59, %c0_60] : memref<16x128xf32, #tpu.memory_space<vmem>>, vector<16x128xf32>
    tpu.vector_store %arg18[%c0_59, %c0_60], %125 {strides = array<i32>} : memref<16x128xf32, #tpu.memory_space<vmem>>, vector<16x128xf32>,
    %c1_i32 = arith.constant 1 : i32
    %127 = arith.cmpi eq, %arg1, %c1_i32 : i32
    %128 = arith.extui %127 : i1 to i32
    %c0_i32_61 = arith.constant 0 : i32
    %129 = arith.cmpi ne, %128, %c0_i32_61 : i32
    scf.if %129 {
      %c0_62 = arith.constant 0 : index
      %c0_63 = arith.constant 0 : index
      %c0_64 = arith.constant 0 : index
      %130 = vector.load %arg17[%c0_62, %c0_63, %c0_64] : memref<1x16x128xf32, #tpu.memory_space<vmem>>, vector<1x16x128xf32>
      %131 = vector.shape_cast %130 : vector<1x16x128xf32> to vector<16x128xf32>
      %132 = vector.shape_cast %125 : vector<16x128xf32> to vector<1x16x128xf32>
      tpu.vector_store %arg17[%c0_62, %c0_63, %c0_64], %132 {strides = array<i32>} : memref<1x16x128xf32, #tpu.memory_space<vmem>>, vector<1x16x128xf32>,
    } else {
    }
    return
  }
  func.func @transform_0(%arg0: i32, %arg1: i32) -> (i32, i32, i32) {
    %c0_i32 = arith.constant 0 : i32
    %c0_i32_0 = arith.constant 0 : i32
    %c0_i32_1 = arith.constant 0 : i32
    return %arg0, %c0_i32, %c0_i32_0 : i32, i32, i32
  }
  func.func @transform_1(%arg0: i32, %arg1: i32) -> (i32, i32) {
    %c0_i32 = arith.constant 0 : i32
    %c0_i32_0 = arith.constant 0 : i32
    %c0_i32_1 = arith.constant 0 : i32
    return %c0_i32, %c0_i32_0 : i32, i32
  }
  func.func @transform_2(%arg0: i32, %arg1: i32) -> (i32, i32) {
    %c0_i32 = arith.constant 0 : i32
    %c0_i32_0 = arith.constant 0 : i32
    %c0_i32_1 = arith.constant 0 : i32
    return %c0_i32, %c0_i32_0 : i32, i32
  }
  func.func @transform_3(%arg0: i32, %arg1: i32) -> (i32, i32, i32) {
    %c0_i32 = arith.constant 0 : i32
    %c0_i32_0 = arith.constant 0 : i32
    %c0_i32_1 = arith.constant 0 : i32
    return %arg1, %c0_i32, %c0_i32_0 : i32, i32, i32
  }
  func.func @transform_4(%arg0: i32, %arg1: i32) -> (i32, i32, i32) {
    %c0_i32 = arith.constant 0 : i32
    %c0_i32_0 = arith.constant 0 : i32
    %c0_i32_1 = arith.constant 0 : i32
    return %arg1, %c0_i32, %c0_i32_0 : i32, i32, i32
  }
  func.func @transform_5(%arg0: i32, %arg1: i32) -> (i32, i32, i32) {
    %c0_i32 = arith.constant 0 : i32
    %c0_i32_0 = arith.constant 0 : i32
    %c0_i32_1 = arith.constant 0 : i32
    return %arg1, %c0_i32, %c0_i32_0 : i32, i32, i32
  }
  func.func @transform_6(%arg0: i32, %arg1: i32) -> (i32, i32, i32) {
    %c0_i32 = arith.constant 0 : i32
    %c0_i32_0 = arith.constant 0 : i32
    %c0_i32_1 = arith.constant 0 : i32
    return %arg1, %c0_i32, %c0_i32_0 : i32, i32, i32
  }
  func.func @transform_7(%arg0: i32, %arg1: i32) -> (i32, i32, i32) {
    %c0_i32 = arith.constant 0 : i32
    %c0_i32_0 = arith.constant 0 : i32
    %c0_i32_1 = arith.constant 0 : i32
    return %arg1, %c0_i32, %c0_i32_0 : i32, i32, i32
  }
  func.func @transform_8(%arg0: i32, %arg1: i32) -> (i32, i32, i32) {
    %c0_i32 = arith.constant 0 : i32
    %c0_i32_0 = arith.constant 0 : i32
    %c0_i32_1 = arith.constant 0 : i32
    return %arg1, %c0_i32, %c0_i32_0 : i32, i32, i32
  }
  func.func @transform_9(%arg0: i32, %arg1: i32) -> (i32, i32, i32) {
    %c0_i32 = arith.constant 0 : i32
    %c0_i32_0 = arith.constant 0 : i32
    %c0_i32_1 = arith.constant 0 : i32
    return %arg1, %c0_i32, %c0_i32_0 : i32, i32, i32
  }
  func.func @transform_10(%arg0: i32, %arg1: i32) -> (i32, i32, i32) {
    %c0_i32 = arith.constant 0 : i32
    %c0_i32_0 = arith.constant 0 : i32
    %c0_i32_1 = arith.constant 0 : i32
    return %arg1, %c0_i32, %c0_i32_0 : i32, i32, i32
  }
  func.func @transform_11(%arg0: i32, %arg1: i32) -> (i32, i32, i32) {
    %c0_i32 = arith.constant 0 : i32
    %c0_i32_0 = arith.constant 0 : i32
    %c0_i32_1 = arith.constant 0 : i32
    return %arg1, %c0_i32, %c0_i32_0 : i32, i32, i32
  }
  func.func @transform_12(%arg0: i32, %arg1: i32) -> (i32, i32, i32) {
    %c0_i32 = arith.constant 0 : i32
    %c0_i32_0 = arith.constant 0 : i32
    %c0_i32_1 = arith.constant 0 : i32
    return %arg1, %c0_i32, %c0_i32_0 : i32, i32, i32
  }
  func.func @transform_13(%arg0: i32, %arg1: i32) -> (i32, i32, i32) {
    %c0_i32 = arith.constant 0 : i32
    %c0_i32_0 = arith.constant 0 : i32
    %c0_i32_1 = arith.constant 0 : i32
    return %arg1, %c0_i32, %c0_i32_0 : i32, i32, i32
  }
  func.func @transform_14(%arg0: i32, %arg1: i32) -> (i32, i32, i32) {
    %c0_i32 = arith.constant 0 : i32
    %c0_i32_0 = arith.constant 0 : i32
    %c0_i32_1 = arith.constant 0 : i32
    return %arg1, %c0_i32, %c0_i32_0 : i32, i32, i32
  }
  func.func @transform_15(%arg0: i32, %arg1: i32) -> (i32, i32, i32) {
    %c0_i32 = arith.constant 0 : i32
    %c0_i32_0 = arith.constant 0 : i32
    %c0_i32_1 = arith.constant 0 : i32
    return %arg0, %c0_i32, %c0_i32_0 : i32, i32, i32
  }
}

</mosaic_0001>

<bundles_post_ra>
// kernel: tpu_custom_call.1
= control target key start
LH: loop header
LB: loop body
LE: loop exit
PB: predicated region body
PF: predicated region fallthrough
CT: control target
= control target key end

     0   :  { %s6389_s0 = inlined_call_operand.hbm [shape: bf16[2,16,192], index: 0, kind: input, shape index: {}]   ;;  %s6390_s1 = inlined_call_operand.hbm [shape: bf16[192,128], index: 1, kind: input, shape index: {}]   ;;  %s6391_s2 = inlined_call_operand.hbm [shape: f32[16,128], index: 2, kind: input, shape index: {}]   ;;  %s6392_s3 = inlined_call_operand.hbm [shape: f32[2,1,128], index: 3, kind: input, shape index: {}]   ;;  %s6393_s4 = inlined_call_operand.hbm [shape: f32[2,1,128], index: 4, kind: input, shape index: {}]   ;;  %s6394_s5 = inlined_call_operand.hbm [shape: bf16[2,128,384], index: 5, kind: input, shape index: {}]   ;;  %s6395_s6 = inlined_call_operand.vmem [shape: f32[2,1,384], index: 6, kind: input, shape index: {}]   ;;  %s6396_s7 = inlined_call_operand.hbm [shape: bf16[2,128,128], index: 7, kind: input, shape index: {}]   ;;  %s6397_s8 = inlined_call_operand.vmem [shape: f32[2,1,128], index: 8, kind: input, shape index: {}]   ;;  %s6398_s9 = inlined_call_operand.vmem [shape: f32[2,1,128], index: 9, kind: input, shape index: {}]   ;;  %s6399_s10 = inlined_call_operand.vmem [shape: f32[2,1,128], index: 10, kind: input, shape index: {}]   ;;  %s6400_s11 = inlined_call_operand.hbm [shape: bf16[2,128,512], index: 11, kind: input, shape index: {}]   ;;  %s6401_s12 = inlined_call_operand.vmem [shape: f32[2,1,512], index: 12, kind: input, shape index: {}]   ;;  %s6402_s13 = inlined_call_operand.hbm [shape: bf16[2,512,128], index: 13, kind: input, shape index: {}]   ;;  %s6403_s14 = inlined_call_operand.vmem [shape: f32[2,1,128], index: 14, kind: input, shape index: {}]   ;;  %s6404_s15 = inlined_call_operand.hbm [shape: f32[2,16,128], index: 15, kind: output, shape index: {}]  }
   0x1   :  { %6458 = sst [smem:[#allocation47_spill]] %s6389_s0 }
   0x2   :  { %6459 = sst [smem:[#allocation48_spill]] %s6390_s1 }
   0x3   :  { %6460 = sst [smem:[#allocation49_spill]] %s6391_s2 }
   0x4   :  { %6461 = sst [smem:[#allocation50_spill]] %s6392_s3 }
   0x5   :  { %6462 = sst [smem:[#allocation51_spill]] %s6393_s4 }
   0x6   :  { %6463 = sst [smem:[#allocation52_spill]] %s6394_s5 }
   0x7   :  { %6464 = sst [smem:[#allocation53_spill]] %s6395_s6 }
   0x8   :  { %6465 = sst [smem:[#allocation54_spill]] %s6396_s7 }
   0x9   :  { %6466 = sst [smem:[#allocation55_spill]] %s6397_s8 }
   0xa   :  { %6467 = sst [smem:[#allocation56_spill]] %s6398_s9 }
   0xb   :  { %6468 = sst [smem:[#allocation57_spill]] %s6399_s10 }
   0xc   :  { %6469 = sst [smem:[#allocation58_spill]] %s6400_s11 }
   0xd   :  { %6470 = sst [smem:[#allocation59_spill]] %s6401_s12 }
   0xe   :  { %6471 = sst [smem:[#allocation60_spill]] %s6402_s13 }
   0xf   :  { %6472 = sst [smem:[#allocation61_spill]] %s6403_s14 }
  0x10   :  { %6473 = sst [smem:[#allocation62_spill]] %s6404_s15 }
  0x11   :  { %20 = vsyncpa [#allocation4], 0 }
  0x12   :  { %22 = vsyncpa [#allocation4 + $0x1], 0 }
  0x13   :  { %23 = vsyncpa [#allocation7], 0 }
  0x14   :  { %24 = vsyncpa [#allocation10], 0 }
  0x15   :  { %26 = vsyncpa [#allocation10 + $0x1], 0 }
  0x16   :  { %27 = vsyncpa [#allocation13], 0 }
  0x17   :  { %29 = vsyncpa [#allocation13 + $0x1], 0 }
  0x18   :  { %30 = vsyncpa [#allocation16], 0 }
  0x19   :  { %32 = vsyncpa [#allocation16 + $0x1], 0 }
  0x1a   :  { %33 = vsyncpa [#allocation5], 0 }
  0x1b   :  { %35 = vsyncpa [#allocation5 + $0x1], 0  ;;  %s5300_s18 = smov 0   ;;  %s5302_s19 = smov 0  }
  0x1c   :  { %s5304_s20 = smov 0   ;;  %s5306_s21 = smov 0  }
  0x1d   :  { %s5308_s22 = smov 0   ;;  %s5310_s23 = smov 0  }
  0x1e   :  { %s5312_s24 = smov 0   ;;  %s5314_s25 = smov 0  }
  0x1f   :  { %s5316_s26 = smov 0   ;;  %s5318_s27 = smov 0  }
  0x20   :  { %s5320_s28 = smov 0  }
  0x21 LB: > { %6474 = sst [smem:[#allocation25_spill]] %s5153_s19  ;;  %s5354_s29 = sadd.s32 4294967295, %s5189_s28   ;;  %s5189_s28 = sphi %s5320_s28, %s41_s28   ;;  %s5185_s27 = sphi %s5318_s27, %s6575_s27   ;;  %s5181_s26 = sphi %s5316_s26, %s6574_s26   ;;  %s5177_s25 = sphi %s5314_s25, %s6573_s25   ;;  %s5173_s24 = sphi %s5312_s24, %s6572_s24   ;;  %s5169_s23 = sphi %s5310_s23, %s6571_s23   ;;  %s5165_s22 = sphi %s5308_s22, %s6570_s22   ;;  %s5161_s21 = sphi %s5306_s21, %s6569_s21   ;;  %s5157_s20 = sphi %s5304_s20, %s6568_s20   ;;  %s5153_s19 = sphi %s5302_s19, %s6567_s19   ;;  %s5149_s18 = sphi %s5300_s18, %s6566_s18  }
  0x22   : > { %6475 = sst [smem:[#allocation26_spill]] %s5157_s20  ;;  %s4068_s30 = sadd.s32 4294967294, %s5189_s28  }
  0x23   : > { %6476 = sst [smem:[#allocation27_spill]] %s5161_s21  ;;  %p73_p0 = scmp.ne.s32.totalorder %s5165_s22, %s5161_s21 }
  0x24   : > { %6477 = sst [smem:[#allocation28_spill]] %s5165_s22  ;;  %p6409_p1 = scmp.eq.s32.totalorder %s5354_s29, 0 }
  0x25   : > { %6478 = sst [smem:[#allocation29_spill]] %s5169_s23  ;;  %p141_p2 = scmp.ne.s32.totalorder %s5153_s19, %s5149_s18 }
  0x26   : > { %6479 = sst [smem:[#allocation30_spill]] %s5173_s24  ;;  %p5364_p4 = por %p6409_p1, %p73_p0 }
  0x27   : > { %6480 = sst [smem:[#allocation31_spill]] %s5177_s25  ;;  %p457_p5 = scmp.eq.s32.totalorder %s4068_s30, 3 }
  0x28   : > { %6481 = sst [smem:[#allocation32_spill]] %s5181_s26  ;;  %p5370_p6 = por %p141_p2, %p6409_p1 }
  0x29   : > { %6482 = sst [smem:[#allocation33_spill]] %s5185_s27  ;;  %p4069_p7 = scmp.ge.s32.totalorder %s5189_s28, 1 }
  0x2a   : > { %6483 = sst [smem:[#allocation34_spill]] %s5189_s28  ;;  %p5375_p8 = por %p457_p5, %p73_p0 }
  0x2b   : > { %s6484_s16 = scalar_select %p5364_p4, 1, 0 }
  0x2c   : > { %s6486_s17 = scalar_select %p5370_p6, 1, 0 }
  0x2d   : > { %6485 = sst [smem:[#allocation35_spill]] %s6484_s16  ;;  %p464_p9 = scmp.lt.s32.totalorder %s5189_s28, 5 }
  0x2e   : > { %6487 = sst [smem:[#allocation36_spill]] %s6486_s17  ;;  %s5191_s21 = smov [#allocation6]  }
  0x2f   : > { %s6488_s15 = scalar_select %p5375_p8, 1, 0 }
  0x30   : > { %p5380_p10 = pnand %p4069_p7, %p464_p9  ;;  %s476_s25 = sshll.u32 %s5191_s21, 4  ;;  %s477_s25 = int_to_ptr.vmem [resolvable:$true] %s476_s25 }
  0x31   : > { %6489 = sst [smem:[#allocation37_spill]] %s6488_s15  ;;  %s50_s14 = sadd.s32 1, %s5181_s26 }
  0x32   : > { %s6490_s18 = scalar_select %p5380_p10, 1, 0 }
  0x33   : > { %p4444_p11 = pneg %p5380_p10  ;;  %s6493_s1 = sld [smem:[#allocation48_spill]] }
  0x34   : > { %6491 = sst [smem:[#allocation38_spill]] %s6490_s18 }
  0x35   : > { %p5388_p12 = pnand %p4444_p11, %p6409_p1 }
  0x37   : > { %s6492_s30 = scalar_select %p5388_p12, 1, 0 }
  0x38   : > { %p6428_p0 = pneg %p5388_p12 }
  0x39   : > { %s4785_s6 = scalar_lea.hbm %s6493_s1, 1536 }
  0x3a   : > { %p4786_p13 = scmp.ne.s32.totalorder %s6493_s1, %s4785_s6  ;;  %p4792_p7 = scmp.lt.u32.totalorder %s4785_s6, %s6493_s1 }
  0x3c   : > { %p4788_p2 = pnand %p6428_p0, %p4786_p13 }
  0x3e   : > { %p4789_p5 = pneg %p4788_p2 }
  0x40   : > { %p4794_p9 = pnand %p4792_p7, %p4789_p5 }
  0x42   : > { %4797 = shalt.err (!%p4794_p9)
}
  0x43   : > { %s4798_s24 = scalar_lea.vmem %s477_s25, 1536  ;;  %p4806_p8 = scmp.lt.s32.totalorder %s477_s25, %s477_s25 }
  0x44   : > { %p4799_p11 = scmp.ne.s32.totalorder %s477_s25, %s4798_s24  ;;  %p4807_p6 = scmp.lt.s32.totalorder %s4798_s24, %s4798_s24 }
  0x46   : > { %p4801_p1 = pnand %p4799_p11, %p6428_p0  ;;  %p4808_p4 = por %p4807_p6, %p4806_p8 }
  0x48   : > { %p4802_p3 = pneg %p4801_p1 }
  0x4a   : > { %p4809_p10 = pnand %p4808_p4, %p4802_p3 }
  0x4c   : > { %4812 = shalt.err (!%p4809_p10)
}
  0x4d   : > { %s6413_s9 = smov 64   ;;  %s6415_s6 = smov 4  }
  0x4e   : > { %4447 = dma.hbm_to_vmem [thread:$0]  (!%p5388_p12), %s6493_s1, 1536, %s477_s25, [#allocation7], %s6413_s9, %s6413_s9, %s6415_s6  }
  0x4f   : > { %p5418_p1 = scmp.ge.s32.totalorder %s50_s14, 2  ;;  %p6427_p3 = scmp.eq.s32.totalorder %s5189_s28, 0 }
  0x50   : > { %s128_s15 = sadd.s32 1, %s5157_s20  ;;  %p135_p4 = scmp.ne.s32.totalorder %s5157_s20, %s5153_s19 }
  0x51   : > { %s6494_s12 = scalar_select %p5418_p1, 1, 0 }
  0x52   : > { %s6577_s14 = smov (%p5418_p1, %s50_s14), 0  ;;  %p137_p6 = por %p135_p4, %p6427_p3 }
  0x53   : > { %6495 = sst [smem:[#allocation39_spill]] %s6577_s14  ;;  %p6426_p8 = scmp.lt.s32.totalorder %s5189_s28, 4 }
  0x54   : > { %s125_s24 = ssub.s32 %s5181_s26, %s6577_s14  ;;  %s5436_s21 = sand.u32 1, %s5189_s28  }
  0x55   : > { %6496 = sst [smem:[#allocation40_spill]] %s5436_s21  ;;  %p126_p10 = scmp.eq.s32.totalorder %s125_s24, 0 }
  0x56   : > { %s5439_s25 = sand.u32 1, %s5157_s20   ;;  %s4076_s8 = sshll.u32 %s5181_s26, 4 }
  0x57   : > { %s5443_s10 = scalar_select %p126_p10, %s5157_s20, %s128_s15  }
  0x58   : > { %s6498_s3 = sld [smem:[#allocation50_spill]]  ;;  %s527_s14 = scalar_lea.vmem [#allocation9], %s5439_s25 }
  0x59   : > { %6497 = sst [smem:[#allocation41_spill]] %s5443_s10  ;;  %s534_s17 = sshll.u32 %s527_s14, 4  ;;  %s5457_s17 = int_to_ptr.vmem [resolvable:$true] %s534_s17 }
  0x5a   : > { %p5453_p13 = pnand %p6426_p8, %p137_p6  ;;  %s6501_s4 = sld [smem:[#allocation51_spill]] }
  0x5b   : > { %s6433_s6 = scalar_lea.sflag [#allocation10], %s5436_s21 }
  0x5c   : > { %s6499_s24 = scalar_select %p5453_p13, 1, 0 }
  0x5d   : > { %p5469_p5 = pneg %p5453_p13 }
  0x5e   : > { %s5448_s1 = scalar_lea.hbm %s6498_s3, %s4076_s8  ;;  %6500 = sst [smem:[#allocation42_spill]] %s6499_s24 }
  0x5f   : > { %s4813_s20 = scalar_lea.hbm %s5448_s1, 16  ;;  %s4818_s18 = scalar_lea.hbm %s6498_s3, 32 }
  0x60   : > { %s5462_s9 = scalar_lea.hbm %s6501_s4, %s4076_s8  ;;  %p4814_p2 = scmp.ne.s32.totalorder %s5448_s1, %s4813_s20 }
  0x61   : > { %s6502_s19 = scalar_select %p5469_p5, 1, 0 }
  0x62   : > { %p4816_p7 = pnand %p5469_p5, %p4814_p2  ;;  %p4819_p11 = scmp.lt.u32.totalorder %s5448_s1, %s6498_s3 }
  0x63   : > { %6503 = sst [smem:[#allocation43_spill]] %s6502_s19  ;;  %p4820_p4 = scmp.lt.u32.totalorder %s4818_s18, %s4813_s20 }
  0x64   : > { %p4817_p9 = pneg %p4816_p7  ;;  %p4822_p10 = scmp.lt.u32.totalorder %s4813_s20, %s5448_s1 }
  0x65   : > { %p4821_p6 = por %p4820_p4, %p4819_p11 }
  0x67   : > { %p4823_p8 = por %p4822_p10, %p4821_p6 }
  0x69   : > { %p4824_p3 = pnand %p4823_p8, %p4817_p9 }
  0x6b   : > { %4827 = shalt.err (!%p4824_p3)
}
  0x6c   : > { %s4828_s8 = scalar_lea.vmem %s5457_s17, 16  ;;  %s5194_s16 = smov [#allocation9]  }
  0x6d   : > { %p4829_p2 = scmp.ne.s32.totalorder %s5457_s17, %s4828_s8  ;;  %s4833_s15 = sshll.u32 %s5194_s16, 4  ;;  %s4834_s15 = int_to_ptr.vmem [resolvable:$false] %s4833_s15 }
  0x6e   : > { %s4835_s7 = scalar_lea.vmem %s4834_s15, 32  ;;  %p4836_p1 = scmp.lt.s32.totalorder %s5457_s17, %s4834_s15 }
  0x6f   : > { %p4831_p7 = pnand %p4829_p2, %p5469_p5  ;;  %p4837_p12 = scmp.lt.s32.totalorder %s4835_s7, %s4828_s8 }
  0x71   : > { %p4832_p0 = pneg %p4831_p7  ;;  %p4838_p11 = por %p4837_p12, %p4836_p1 }
  0x73   : > { %p4839_p4 = pnand %p4838_p11, %p4832_p0 }
  0x75   : > { %4842 = shalt.err (!%p4839_p4)
}
  0x76   : > { %4457 = dma.hbm_to_vmem [thread:$0]  (!%p5453_p13), %s5448_s1, 16, %s5457_s17, %s6433_s6  }
  0x77   : > { %s4416_s20 = smul.u32 192, %s5439_s25  ;;  %s6504_s5 = sld [smem:[#allocation52_spill]] }
  0x78   : > { %s4417_s18 = smul.u32 3072, %s5181_s26  ;;  %s4082_s7 = sshll.u32 %s5439_s25, 8 }
  0x79   : > { %s562_s16 = scalar_lea.vmem [#allocation12], %s4416_s20  ;;  %s6434_s3 = scalar_lea.sflag [#allocation13], %s5436_s21 }
  0x7a   : > { %s569_s15 = sshll.u32 %s562_s16, 4  ;;  %s5501_s15 = int_to_ptr.vmem [resolvable:$true] %s569_s15 }
  0x7d   : > { %s5499_s8 = scalar_lea.hbm %s6504_s5, %s4417_s18  ;;  %s4848_s18 = scalar_lea.hbm %s6504_s5, 6144 }
  0x7e   : > { %s4843_s4 = scalar_lea.hbm %s5499_s8, 3072  ;;  %p4849_p3 = scmp.lt.u32.totalorder %s5499_s8, %s6504_s5 }
  0x7f   : > { %p4844_p12 = scmp.ne.s32.totalorder %s5499_s8, %s4843_s4  ;;  %p4850_p8 = scmp.lt.u32.totalorder %s4848_s18, %s4843_s4 }
  0x80   : > { %p4852_p6 = scmp.lt.u32.totalorder %s4843_s4, %s5499_s8 }
  0x81   : > { %p4846_p0 = pnand %p4844_p12, %p5469_p5  ;;  %p4851_p9 = por %p4850_p8, %p4849_p3 }
  0x83   : > { %p4847_p1 = pneg %p4846_p0  ;;  %p4853_p10 = por %p4852_p6, %p4851_p9 }
  0x85   : > { %p4854_p2 = pnand %p4853_p10, %p4847_p1 }
  0x87   : > { %4857 = shalt.err (!%p4854_p2)
}
  0x88   : > { %s4858_s20 = scalar_lea.vmem %s5501_s15, 3072  ;;  %s5195_s16 = smov [#allocation12]  }
  0x89   : > { %p4859_p7 = scmp.ne.s32.totalorder %s5501_s15, %s4858_s20  ;;  %s4863_s1 = sshll.u32 %s5195_s16, 4  ;;  %s4864_s1 = int_to_ptr.vmem [resolvable:$false] %s4863_s1 }
  0x8a   : > { %s4865_s17 = scalar_lea.vmem %s4864_s1, 6144  ;;  %p4866_p12 = scmp.lt.s32.totalorder %s5501_s15, %s4864_s1 }
  0x8b   : > { %p4861_p11 = pnand %p4859_p7, %p5469_p5  ;;  %p4867_p0 = scmp.lt.s32.totalorder %s4865_s17, %s4858_s20 }
  0x8d   : > { %p4862_p4 = pneg %p4861_p11  ;;  %p4868_p3 = por %p4867_p0, %p4866_p12 }
  0x8f   : > { %p4869_p8 = pnand %p4868_p3, %p4862_p4 }
  0x91   : > { %4872 = shalt.err (!%p4869_p8)
}
  0x92   : > { %s5196_s4 = smov 192   ;;  %s5197_s18 = smov 12  }
  0x93   : > { %4463 = dma.hbm_to_vmem [thread:$0]  (!%p5453_p13), %s5499_s8, 3072, %s5501_s15, %s6434_s3, %s5196_s4, %s5196_s4, %s5197_s18  }
  0x94   : > { %s4247_s14 = sshll.u32 %s5181_s26, 12  ;;  %s6505_s11 = sld [smem:[#allocation58_spill]] }
  0x95   : > { %s629_s1 = scalar_lea.vmem [#allocation15], %s4082_s7  ;;  %s6445_s6 = scalar_lea.sflag [#allocation16], %s5436_s21 }
  0x96   : > { %s636_s17 = sshll.u32 %s629_s1, 4  ;;  %s5538_s17 = int_to_ptr.vmem [resolvable:$true] %s636_s17 }
  0x9a   : > { %s5534_s16 = scalar_lea.hbm %s6505_s11, %s4247_s14  ;;  %s4878_s4 = scalar_lea.hbm %s6505_s11, 8192 }
  0x9b   : > { %s4873_s5 = scalar_lea.hbm %s5534_s16, 4096  ;;  %p4879_p10 = scmp.lt.u32.totalorder %s5534_s16, %s6505_s11 }
  0x9c   : > { %p4874_p1 = scmp.ne.s32.totalorder %s5534_s16, %s4873_s5  ;;  %p4880_p2 = scmp.lt.u32.totalorder %s4878_s4, %s4873_s5 }
  0x9d   : > { %p4882_p11 = scmp.lt.u32.totalorder %s4873_s5, %s5534_s16 }
  0x9e   : > { %p4876_p9 = pnand %p4874_p1, %p5469_p5  ;;  %p4881_p7 = por %p4880_p2, %p4879_p10 }
  0xa0   : > { %p4877_p6 = pneg %p4876_p9  ;;  %p4883_p4 = por %p4882_p11, %p4881_p7 }
  0xa2   : > { %p4884_p12 = pnand %p4883_p4, %p4877_p6 }
  0xa4   : > { %4887 = shalt.err (!%p4884_p12)
}
  0xa5   : > { %s4888_s20 = scalar_lea.vmem %s5538_s17, 4096  ;;  %s5198_s1 = smov [#allocation15]  }
  0xa6   : > { %p4889_p0 = scmp.ne.s32.totalorder %s5538_s17, %s4888_s20  ;;  %s4893_s8 = sshll.u32 %s5198_s1, 4  ;;  %s4894_s8 = int_to_ptr.vmem [resolvable:$false] %s4893_s8 }
  0xa7   : > { %s4895_s15 = scalar_lea.vmem %s4894_s8, 8192  ;;  %p4896_p1 = scmp.lt.s32.totalorder %s5538_s17, %s4894_s8 }
  0xa8   : > { %p4891_p3 = pnand %p4889_p0, %p5469_p5  ;;  %p4897_p9 = scmp.lt.s32.totalorder %s4895_s15, %s4888_s20 }
  0xaa   : > { %p4892_p8 = pneg %p4891_p3  ;;  %p4898_p10 = por %p4897_p9, %p4896_p1 }
  0xac   : > { %p4899_p2 = pnand %p4898_p10, %p4892_p8 }
  0xae   : > { %4902 = shalt.err (!%p4899_p2)
}
  0xaf   : > { %s5199_s5 = smov 256   ;;  %s5200_s4 = smov 16  }
  0xb0   : > { %4469 = dma.hbm_to_vmem [thread:$0]  (!%p5453_p13), %s5534_s16, 4096, %s5538_s17, %s6445_s6, %s5199_s5, %s5199_s5, %s5200_s4  }
  0xb1   : > { %s6506_s13 = sld [smem:[#allocation60_spill]]  ;;  %s657_s1 = scalar_lea.vmem [#allocation17], %s4082_s7 }
  0xb2   : > { %s664_s8 = sshll.u32 %s657_s1, 4  ;;  %s5201_s15 = smov [#allocation8]   ;;  %s5573_s8 = int_to_ptr.vmem [resolvable:$true] %s664_s8 }
  0xb3   : > { %s489_s3 = sshll.u32 %s5201_s15, 4  ;;  %s6507_s2 = sld [smem:[#allocation49_spill]]  ;;  %s490_s3 = int_to_ptr.vmem [resolvable:$true] %s489_s3 }
  0xb4   : > { %p6508_p7 = scmp.ne.s32.totalorder %s6492_s30, 0 }
  0xb6   : > { %p6509_p11 = pneg %p6508_p7 }
  0xb7   : > { %s5569_s20 = scalar_lea.hbm %s6506_s13, %s4247_s14 }
  0xb9   : > { %s4903_s24 = scalar_lea.hbm %s6507_s2, 256 }
  0xba   : > { %p4904_p6 = scmp.ne.s32.totalorder %s6507_s2, %s4903_s24  ;;  %p4910_p0 = scmp.lt.u32.totalorder %s4903_s24, %s6507_s2 }
  0xbc   : > { %p4906_p4 = pnand %p4904_p6, %p6509_p11 }
  0xbe   : > { %p4907_p12 = pneg %p4906_p4 }
  0xc0   : > { %p4912_p3 = pnand %p4910_p0, %p4907_p12 }
  0xc2   : > { %4915 = shalt.err (!%p4912_p3)
}
  0xc3   : > { %s4916_s17 = scalar_lea.vmem %s490_s3, 256  ;;  %p6510_p1 = pmov %p6509_p11 }
  0xc4   : > { %p4917_p8 = scmp.ne.s32.totalorder %s490_s3, %s4916_s17  ;;  %p4924_p2 = scmp.lt.s32.totalorder %s490_s3, %s490_s3 }
  0xc5   : > { %p4925_p13 = scmp.lt.s32.totalorder %s4916_s17, %s4916_s17 }
  0xc6   : > { %p4919_p9 = pnand %p4917_p8, %p6510_p1 }
  0xc7   : > { %p4926_p5 = por %p4925_p13, %p4924_p2 }
  0xc8   : > { %p4920_p10 = pneg %p4919_p9 }
  0xca   : > { %p4927_p6 = pnand %p4926_p5, %p4920_p10 }
  0xcc   : > { %4930 = shalt.err (!%p4927_p6)
}
  0xcd   : > { %s5202_s11 = smov 128   ;;  %s5203_s19 = smov 8  }
  0xce   : > { %4450 = dma.hbm_to_vmem [thread:$0]  (!%p6508_p7), %s6507_s2, 256, %s490_s3, [#allocation7], %s5202_s11, %s5202_s11, %s5203_s19  }
  0xcf   : > { %s53_s5 = sadd.s32 1, %s5185_s27  ;;  %s60_s4 = sadd.s32 1, %s5169_s23 }
  0xd0   : > { %p6511_p13 = scmp.ne.s32.totalorder %s6494_s12, 0  ;;  %p67_p5 = scmp.ne.s32.totalorder %s5169_s23, %s5165_s22 }
  0xd1   : > { %s503_s18 = sand.u32 1, %s5169_s23   ;;  %p6512_p4 = scmp.eq.s32.totalorder %s5189_s28, 0 }
  0xd2   : > { %s6579_s5 = smov (!%p6511_p13, %s53_s5), %s5185_s27  ;;  %p6513_p0 = scmp.eq.s32.totalorder %s5354_s29, 3 }
  0xd3   : > { %p55_p11 = scmp.ge.s32.totalorder %s6579_s5, 2  ;;  %p69_p12 = por %p6512_p4, %p67_p5 }
  0xd4   : > { %p5610_p3 = por %p6513_p0, %p67_p5  ;;  %s4073_s3 = sshll.u32 %s503_s18, 4 }
  0xd5   : > { %s6581_s5 = smov (%p55_p11, %s6579_s5), 0  ;;  %s4245_s10 = sshll.u32 %s5185_s27, 8 }
  0xd6   : > { %s6514_s30 = scalar_select %p5610_p3, 1, 0 }
  0xd7   : > { %6516 = sst [smem:[#allocation45_spill]] %s6581_s5  ;;  %s57_s1 = ssub.s32 %s5185_s27, %s6581_s5 }
  0xd8   : > { %6515 = sst [smem:[#allocation44_spill]] %s6514_s30  ;;  %p58_p7 = scmp.eq.s32.totalorder %s57_s1, 0 }
  0xd9   : > { %s6517_s0 = sld [smem:[#allocation47_spill]]  ;;  %s507_s14 = scalar_lea.vmem [#allocation3], %s4073_s3 }
  0xda   : > { %s514_s7 = sshll.u32 %s507_s14, 4  ;;  %p6518_p8 = scmp.lt.s32.totalorder %s5189_s28, 4  ;;  %s5633_s7 = int_to_ptr.vmem [resolvable:$true] %s514_s7 }
  0xdb   : > { %s5631_s21 = scalar_select %p58_p7, %s5169_s23, %s60_s4  }
  0xdc   : > { %p5626_p1 = pnand %p6518_p8, %p69_p12  ;;  %s5635_s24 = scalar_lea.sflag [#allocation4], %s503_s18 }
  0xdd   : > { %6520 = sst [smem:[#allocation46_spill]] %s5631_s21 }
  0xde   : > { %p4933_p10 = pneg %p5626_p1 }
  0xdf   : > { %s5622_s16 = scalar_lea.hbm %s6517_s0, %s4245_s10  ;;  %s4936_s12 = scalar_lea.hbm %s6517_s0, 512 }
  0xe0   : > { %s4931_s10 = scalar_lea.hbm %s5622_s16, 256  ;;  %p4937_p13 = scmp.lt.u32.totalorder %s5622_s16, %s6517_s0 }
  0xe1   : > { %p4932_p9 = scmp.ne.s32.totalorder %s5622_s16, %s4931_s10  ;;  %p4938_p5 = scmp.lt.u32.totalorder %s4936_s12, %s4931_s10 }
  0xe2   : > { %p4940_p4 = scmp.lt.u32.totalorder %s4931_s10, %s5622_s16 }
  0xe3   : > { %p4934_p2 = pnand %p4933_p10, %p4932_p9  ;;  %p4939_p11 = por %p4938_p5, %p4937_p13 }
  0xe5   : > { %p4935_p6 = pneg %p4934_p2  ;;  %p4941_p12 = por %p4940_p4, %p4939_p11 }
  0xe7   : > { %p4942_p0 = pnand %p4941_p12, %p4935_p6 }
  0xe9   : > { %4945 = shalt.err (!%p4942_p0)
}
  0xea   : > { %s4946_s4 = scalar_lea.vmem %s5633_s7, 256  ;;  %s5204_s18 = smov [#allocation3]  }
  0xeb   : > { %p4947_p7 = scmp.ne.s32.totalorder %s5633_s7, %s4946_s4  ;;  %s4951_s3 = sshll.u32 %s5204_s18, 4  ;;  %s4952_s3 = int_to_ptr.vmem [resolvable:$false] %s4951_s3 }
  0xec   : > { %s4953_s1 = scalar_lea.vmem %s4952_s3, 512  ;;  %p4954_p2 = scmp.lt.s32.totalorder %s5633_s7, %s4952_s3 }
  0xed   : > { %p4949_p8 = pnand %p4947_p7, %p4933_p10  ;;  %p4955_p13 = scmp.lt.s32.totalorder %s4953_s1, %s4946_s4 }
  0xef   : > { %p4950_p9 = pneg %p4949_p8  ;;  %p4956_p5 = por %p4955_p13, %p4954_p2 }
  0xf1   : > { %p4957_p11 = pnand %p4956_p5, %p4950_p9 }
  0xf3   : > { %4960 = shalt.err (!%p4957_p11)
}
  0xf4   : > { %s6521_s10 = sld [smem:[#allocation43_spill]]  ;;  %s4079_s12 = sshll.u32 %s5439_s25, 6 }
  0xf5   : > { %4454 = dma.hbm_to_vmem [thread:$0]  (!%p5626_p1), %s5622_s16, 256, %s5633_s7, %s5635_s24, %s5202_s11, %s5202_s11, %s5203_s19  }
  0xf6   : > { %s544_s15 = scalar_lea.vmem [#allocation11], %s5439_s25  ;;  %s4246_s17 = sshll.u32 %s5181_s26, 10 }
  0xf7   : > { %s551_s14 = sshll.u32 %s544_s15, 4  ;;  %s4961_s4 = scalar_lea.hbm %s5462_s9, 16  ;;  %s552_s14 = int_to_ptr.vmem [resolvable:$true] %s551_s14 }
  0xf8   : > { %p4962_p10 = scmp.ne.s32.totalorder %s5462_s9, %s4961_s4  ;;  %s6523_s1 = sld [smem:[#allocation51_spill]] }
  0xf9   : > { %p4970_p8 = scmp.lt.u32.totalorder %s4961_s4, %s5462_s9 }
  0xfa   : > { %p6522_p6 = scmp.ne.s32.totalorder %s6521_s10, 0 }
  0xfc   : > { %p4964_p4 = pnand %p4962_p10, %p6522_p6 }
  0xfe   : > { %p4965_p12 = pneg %p4964_p4  ;;  %s4966_s6 = scalar_lea.hbm %s6523_s1, 32 }
  0xff   : > { %p4967_p0 = scmp.lt.u32.totalorder %s5462_s9, %s6523_s1  ;;  %p4968_p7 = scmp.lt.u32.totalorder %s4966_s6, %s4961_s4 }
 0x101   : > { %p4969_p1 = por %p4968_p7, %p4967_p0 }
 0x103   : > { %p4971_p9 = por %p4970_p8, %p4969_p1 }
 0x105   : > { %p4972_p2 = pnand %p4971_p9, %p4965_p12 }
 0x107   : > { %4975 = shalt.err (!%p4972_p2)
}
 0x108   : > { %s4976_s11 = scalar_lea.vmem %s552_s14, 16  ;;  %s5205_s19 = smov [#allocation11]  }
 0x109   : > { %p4977_p13 = scmp.ne.s32.totalorder %s552_s14, %s4976_s11  ;;  %s4981_s16 = sshll.u32 %s5205_s19, 4  ;;  %s4982_s16 = int_to_ptr.vmem [resolvable:$false] %s4981_s16 }
 0x10a   : > { %s4983_s7 = scalar_lea.vmem %s4982_s16, 32  ;;  %p4984_p10 = scmp.lt.s32.totalorder %s552_s14, %s4982_s16 }
 0x10b   : > { %p4979_p5 = pnand %p4977_p13, %p6522_p6  ;;  %p4985_p4 = scmp.lt.s32.totalorder %s4983_s7, %s4976_s11 }
 0x10d   : > { %p4980_p11 = pneg %p4979_p5  ;;  %p4986_p3 = por %p4985_p4, %p4984_p10 }
 0x10f   : > { %p4987_p0 = pnand %p4986_p3, %p4980_p11 }
 0x111   : > { %4990 = shalt.err (!%p4987_p0)
}
 0x112   : > { %s6524_s0 = sld [smem:[#allocation42_spill]]  ;;  %s6526_s2 = sld [smem:[#allocation40_spill]] }
 0x113   : > { %s6528_s4 = sld [smem:[#allocation54_spill]]  ;;  %s590_s3 = scalar_lea.vmem [#allocation14], %s4079_s12 }
 0x114   : > { %s597_s1 = sshll.u32 %s590_s3, 4  ;;  %s5695_s1 = int_to_ptr.vmem [resolvable:$true] %s597_s1 }
 0x118   : > { %p6525_p7 = scmp.ne.s32.totalorder %s6524_s0, 0  ;;  %s6527_s6 = scalar_lea.sflag [#allocation10], %s6526_s2 }
 0x119   : > { %s5691_s18 = scalar_lea.hbm %s6528_s4, %s4246_s17  ;;  %s4996_s19 = scalar_lea.hbm %s6528_s4, 2048 }
 0x11a   : > { %4460 = dma.hbm_to_vmem [thread:$0]  (!%p6525_p7), %s5462_s9, 16, %s552_s14, %s6527_s6  }
 0x11b   : > { %s4991_s11 = scalar_lea.hbm %s5691_s18, 1024  ;;  %p4997_p8 = scmp.lt.u32.totalorder %s5691_s18, %s6528_s4 }
 0x11c   : > { %p4992_p3 = scmp.ne.s32.totalorder %s5691_s18, %s4991_s11  ;;  %p4998_p9 = scmp.lt.u32.totalorder %s4996_s19, %s4991_s11 }
 0x11d   : > { %p5000_p13 = scmp.lt.u32.totalorder %s4991_s11, %s5691_s18 }
 0x11e   : > { %p4994_p12 = pnand %p4992_p3, %p6522_p6  ;;  %p4999_p2 = por %p4998_p9, %p4997_p8 }
 0x120   : > { %p4995_p1 = pneg %p4994_p12  ;;  %p5001_p5 = por %p5000_p13, %p4999_p2 }
 0x122   : > { %p5002_p11 = pnand %p5001_p5, %p4995_p1 }
 0x124   : > { %5005 = shalt.err (!%p5002_p11)
}
 0x125   : > { %s5006_s25 = scalar_lea.vmem %s5695_s1, 1024  ;;  %s5206_s12 = smov [#allocation14]  }
 0x126   : > { %p5007_p10 = scmp.ne.s32.totalorder %s5695_s1, %s5006_s25  ;;  %s5011_s7 = sshll.u32 %s5206_s12, 4  ;;  %s5012_s7 = int_to_ptr.vmem [resolvable:$false] %s5011_s7 }
 0x127   : > { %s5013_s6 = scalar_lea.vmem %s5012_s7, 2048  ;;  %p5014_p3 = scmp.lt.s32.totalorder %s5695_s1, %s5012_s7 }
 0x128   : > { %p5009_p4 = pnand %p5007_p10, %p6522_p6  ;;  %p5015_p12 = scmp.lt.s32.totalorder %s5013_s6, %s5006_s25 }
 0x12a   : > { %p5010_p0 = pneg %p5009_p4  ;;  %p5016_p8 = por %p5015_p12, %p5014_p3 }
 0x12c   : > { %p5017_p9 = pnand %p5016_p8, %p5010_p0 }
 0x12e   : > { %5020 = shalt.err (!%p5017_p9)
}
 0x12f   : > { %s6529_s24 = smov 4   ;;  %s6530_s15 = smov 64  }
 0x130   : > { %s6531_s3 = scalar_lea.sflag [#allocation13], %s6526_s2  ;;  %s5021_s11 = scalar_lea.hbm %s5569_s20, 4096 }
 0x131   : > { %4466 = dma.hbm_to_vmem [thread:$0]  (!%p6525_p7), %s5691_s18, 1024, %s5695_s1, %s6531_s3, %s6530_s15, %s6530_s15, %s6529_s24  }
 0x132   : > { %p5022_p1 = scmp.ne.s32.totalorder %s5569_s20, %s5021_s11  ;;  %s5026_s19 = scalar_lea.hbm %s6506_s13, 8192 }
 0x133   : > { %p5027_p5 = scmp.lt.u32.totalorder %s5569_s20, %s6506_s13  ;;  %p5028_p11 = scmp.lt.u32.totalorder %s5026_s19, %s5021_s11 }
 0x134   : > { %p5024_p2 = pnand %p5022_p1, %p6522_p6  ;;  %p5030_p4 = scmp.lt.u32.totalorder %s5021_s11, %s5569_s20 }
 0x135   : > { %p5029_p10 = por %p5028_p11, %p5027_p5 }
 0x136   : > { %p5025_p13 = pneg %p5024_p2 }
 0x137   : > { %p5031_p0 = por %p5030_p4, %p5029_p10 }
 0x139   : > { %p5032_p3 = pnand %p5031_p0, %p5025_p13 }
 0x13b   : > { %5035 = shalt.err (!%p5032_p3)
}
 0x13c   : > { %s5036_s18 = scalar_lea.vmem %s5573_s8, 4096  ;;  %s5207_s1 = smov [#allocation17]  }
 0x13d   : > { %p5037_p12 = scmp.ne.s32.totalorder %s5573_s8, %s5036_s18  ;;  %s5041_s25 = sshll.u32 %s5207_s1, 4  ;;  %s5042_s25 = int_to_ptr.vmem [resolvable:$false] %s5041_s25 }
 0x13e   : > { %s5043_s12 = scalar_lea.vmem %s5042_s25, 8192  ;;  %p5044_p1 = scmp.lt.s32.totalorder %s5573_s8, %s5042_s25 }
 0x13f   : > { %p5039_p8 = pnand %p5037_p12, %p6522_p6  ;;  %p5045_p2 = scmp.lt.s32.totalorder %s5043_s12, %s5036_s18 }
 0x141   : > { %p5040_p9 = pneg %p5039_p8  ;;  %p5046_p5 = por %p5045_p2, %p5044_p1 }
 0x143   : > { %p5047_p11 = pnand %p5046_p5, %p5040_p9 }
 0x145   : > { %5050 = shalt.err (!%p5047_p11)
}
 0x146   : > { %s6532_s7 = scalar_lea.sflag [#allocation16], %s6526_s2  ;;  %s6533_s10 = sld [smem:[#allocation38_spill]] }
 0x147   : > { %4472 = dma.hbm_to_vmem [thread:$0]  (!%p6525_p7), %s5569_s20, 4096, %s5573_s8, %s6532_s7, %s6530_s15, %s6530_s15, %s6529_s24  }
 0x14c   : > { %p6534_p6 = scmp.ne.s32.totalorder %s6533_s10, 0 }
 0x14d   : > { %s6535_s6 = sld [smem:[#allocation35_spill]] (!%p6534_p6)  ;;  %s5752_s3 = sand.u32 (!%p6534_p6), 1, %s5165_s22  }
 0x14e   : > { %682 = sbr.rel (%p6534_p6) target bundleno = 3285 (0xcd5), region = 80  ;;  %s6447_s11 = sshll.u32 (!%p6534_p6), %s5752_s3, 4 }
 0x14f   : > { %s685_s0 = scalar_lea.sflag (!%p6534_p6), [#allocation4], %s5752_s3  ;;  %s5758_s9 = scalar_lea.vmem (!%p6534_p6), [#allocation3], %s6447_s11 }
 0x153   : > { %p6536_p13 = scmp.ne.s32.totalorder (!%p6534_p6), %s6535_s6, 0 }
 0x155   : > { %5124 = dma.done.wait (%p6536_p13), %s685_s0, 256  }
 0x156   : > { %5126 = vsyncadd (%p6536_p13), %s685_s0, 4294967040  ;;  %p6537_p7 = scmp.eq.s32.totalorder %s5354_s29, 0 }
 0x158   : > { %5128 = dma.done.wait (%p6537_p7), [#allocation7], 1792   ;;  %p6538_p10 = pmov %p6537_p7 }
 0x159   : > { %s6539_s20 = sld [smem:[#allocation25_spill]]  ;;  %s6540_s8 = sld [smem:[#allocation36_spill]] }
 0x15a   : > { %5130 = vsyncadd (%p6538_p10), [#allocation7], 4294965504  ;;  %s701_s2 = sand.u32 1, %s5354_s29  }
 0x15b   : > { %s702_s15 = scalar_lea.sflag [#allocation10], %s701_s2 }
 0x15f   : > { %s5770_s24 = sand.u32 1, %s6539_s20   ;;  %p6541_p4 = scmp.ne.s32.totalorder %s6540_s8, 0 }
 0x161   : > { %5132 = dma.done.wait (%p6541_p4), %s702_s15, 32  }
 0x162   : > { %5134 = vsyncadd (%p6541_p4), %s702_s15, 4294967264  ;;  %s4418_s19 = smul.u32 192, %s5770_s24  ;;  %s718_s16 = scalar_lea.sflag [#allocation13], %s701_s2 }
 0x164   : > { %s5779_s18 = scalar_lea.vmem [#allocation12], %s4418_s19 }
 0x165   : > { %5136 = dma.done.wait (%p6541_p4), %s718_s16, 4096  }
 0x166   : > { %5138 = vsyncadd (%p6541_p4), %s718_s16, 4294963200  ;;  %s4092_s29 = sshll.u32 %s5770_s24, 6  ;;  %s4093_s1 = sshll.u32 %s5770_s24, 8 }
 0x167   : > { %s5787_s25 = scalar_lea.vmem [#allocation14], %s4092_s29  ;;  %s736_s12 = scalar_lea.sflag [#allocation16], %s701_s2 }
 0x168   : > { %s5789_s7 = scalar_lea.vmem [#allocation15], %s4093_s1 }
 0x169   : > { %5140 = dma.done.wait (%p6541_p4), %s736_s12, 8192  }
 0x16a   : > { %5142 = vsyncadd (%p6541_p4), %s736_s12, 4294959104  ;;  %s6542_s10 = sld [smem:[#allocation30_spill]]  ;;  %s6543_s15 = sld [smem:[#allocation55_spill]] }
 0x16b   : > { %s6544_s29 = sld [smem:[#allocation56_spill]]  ;;  %s6545_s11 = sld [smem:[#allocation57_spill]] }
 0x16c   : > { %s6546_s27 = sld [smem:[#allocation53_spill]]  ;;  %s6547_s28 = sld [smem:[#allocation59_spill]] }
 0x16d   : > { %s5827_s8 = scalar_lea.vmem [#allocation17], %s4093_s1 }
 0x170   : > { %p843_p0 = scmp.lt.s32.totalorder %s6542_s10, 1  ;;  %p4097_p3 = scmp.ne.s32.totalorder %s6542_s10, 0 }
 0x171   : > { %v4592_v0 = vld [vmem:[#allocation6] sm:$0xff] (!%p4097_p3)   ;;  %v5208_v1 = vmov (!%p4097_p3), 0   ;;  %v4593_v2 = vld [vmem:[#allocation6 + $0x8] sm:$0xff] (!%p4097_p3)   ;;  %v4594_v3 = vld [vmem:[#allocation6 + $0x10] sm:$0xff] (!%p4097_p3)   ;;  %vm977_vm0 = vcmask (!%p4097_p3), 523264  }
 0x172   : > { %s5797_s6 = scalar_select %p843_p0, %s6542_s10, 1 }
 0x173   : > { %981 = vmatprep.subr.bf16.mxu0 (!%p4097_p3), %v5208_v1  ;;  %v4595_v4 = vld [vmem:[#allocation6 + $0x18] sm:$0xff] (!%p4097_p3)   ;;  %v4596_v6 = vld [vmem:[#allocation6 + $0x20] sm:$0xff] (!%p4097_p3)   ;;  %v4597_v7 = vld [vmem:[#allocation6 + $0x28] sm:$0xff] (!%p4097_p3)  }
 0x174   : > { %s4419_s0 = smul.u32 3, %s5797_s6  ;;  %s849_s19 = scalar_lea.vmem %s6543_s15, %s5797_s6  ;;  %982 = vmatpush1.bf16.msra.mxu0 (!%p4097_p3), %v4592_v0  ;;  %v4606_v5 = vld [vmem:[%s5758_s9 + $0x4] ss:$8 sps:$4 sm:$0xff] (!%p4097_p3)   ;;  %v4604_v14 = vld [vmem:[%s5758_s9] ss:$8 sps:$4 sm:$0xff] (!%p4097_p3)  }
 0x175   : > { %s852_s12 = scalar_lea.vmem %s6544_s29, %s5797_s6  ;;  %s855_s4 = scalar_lea.vmem %s6545_s11, %s5797_s6  ;;  %983 = vmatprep.subr.bf16.mxu0 (!%p4097_p3), %v5208_v1  ;;  %4112 = vmatprep.mubr.msk.bf16.mxu0 (!%p4097_p3), %vm977_vm0, %v4606_v5  ;;  %v4598_v8 = vld [vmem:[#allocation6 + $0x30] sm:$0xff] (!%p4097_p3)   ;;  %v4599_v9 = vld [vmem:[#allocation6 + $0x38] sm:$0xff] (!%p4097_p3)   ;;  %v4600_v10 = vld [vmem:[#allocation6 + $0x40] sm:$0xff] (!%p4097_p3)  }
 0x176   : > { %s5815_s26 = scalar_lea.vmem %s6546_s27, %s4419_s0  ;;  %s4096_s21 = sshll.u32 %s5797_s6, 2  ;;  %v4601_v11 = vld [vmem:[#allocation6 + $0x48] sm:$0xff] (!%p4097_p3)   ;;  %v4602_v12 = vld [vmem:[#allocation6 + $0x50] sm:$0xff] (!%p4097_p3)   ;;  %v4603_v13 = vld [vmem:[#allocation6 + $0x58] sm:$0xff] (!%p4097_p3)  }
 0x177   : > { %s5821_s30 = scalar_lea.vmem %s6547_s28, %s4096_s21  ;;  %s6548_s15 = sld [smem:[#allocation61_spill]]  ;;  %v894_v15 = vld [vmem:[#allocation8] sm:$0xff] (!%p4097_p3)  ;;  %v895_v17 = vld [vmem:[#allocation8 + $0x8] sm:$0xff] (!%p4097_p3) }
 0x178   : > { %s6549_s29 = sshll.u32 %s5752_s3, 4  ;;  %867 = sbr.rel (%p4097_p3) target bundleno = 636 (0x27c), region = 120  ;;  %984 = vmatpush1.bf16.msra.mxu0 (!%p4097_p3), %v4593_v2 }
 0x179   : > { %s5831_s14 = scalar_lea.vmem [#allocation18], %s6549_s29  ;;  %985 = vmatprep.subr.bf16.mxu0 (!%p4097_p3), %v5208_v1 }
 0x17c   : > { %986 = vmatpush1.bf16.msra.mxu0 (!%p4097_p3), %v4594_v3 }
 0x17d   : > { %s862_s16 = scalar_lea.vmem %s6548_s15, %s5797_s6  ;;  %987 = vmatprep.subr.bf16.mxu0 (!%p4097_p3), %v5208_v1 }
 0x180   : > { %988 = vmatpush1.bf16.msra.mxu0 %v4595_v4 }
 0x181   : > { %989 = vmatprep.subr.bf16.mxu0 %v5208_v1 }
 0x184   : > { %990 = vmatpush1.bf16.msra.mxu0 %v4596_v6 }
 0x185   : > { %991 = vmatprep.subr.bf16.mxu0 %v5208_v1 }
 0x188   : > { %992 = vmatpush1.bf16.msra.mxu0 %v4597_v7 }
 0x189   : > { %993 = vmatprep.subr.bf16.mxu0 %v5208_v1 }
 0x18c   : > { %994 = vmatpush1.bf16.msra.mxu0 %v4598_v8 }
 0x18d   : > { %995 = vmatprep.subr.bf16.mxu0 %v5208_v1 }
 0x190   : > { %996 = vmatpush1.bf16.msra.mxu0 %v4599_v9 }
 0x191   : > { %997 = vmatprep.subr.bf16.mxu0 %v5208_v1 }
 0x194   : > { %998 = vmatpush1.bf16.msra.mxu0 %v4600_v10 }
 0x195   : > { %999 = vmatprep.subr.bf16.mxu0 %v5208_v1 }
 0x198   : > { %1000 = vmatpush1.bf16.msra.mxu0 %v4601_v11 }
 0x199   : > { %1001 = vmatprep.subr.bf16.mxu0 %v5208_v1 }
 0x19c   : > { %1002 = vmatpush1.bf16.msra.mxu0 %v4602_v12 }
 0x19d   : > { %1003 = vmatprep.subr.bf16.mxu0 %v5208_v1 }
 0x1a0   : > { %1004 = vmatpush1.bf16.msra.mxu0 %v4603_v13 }
 0x1a3   : > { %1014 = vmatmul.mubr.bf16.vlgmr.msra.gmra.mrb[0].mxu0 %v4604_v14 }
 0x276   : > { %v1015_v16 = vpop.f32.mrb[0].mxu0 }
 0x277   : > { %v1016_v18 = vadd.f32 %v1015_v16, %v894_v15  ;;  %v1017_v19 = vpop.f32.mrb[1].mxu0 }
 0x278   : > { %v1018_v20 = vpop.f32.mrb[2].mxu0 }
 0x279   : > { %1022 = vst [vmem:[#allocation2] sm:$0xff] %v1016_v18  ;;  %v1019_v21 = vadd.f32 %v1018_v20, %v895_v17  ;;  %v1020_v22 = vpop.f32.mrb[3].mxu0 }
 0x27b   : > { %1023 = vst [vmem:[#allocation2 + $0x8] sm:$0xff] %v1019_v21 }
 0x27c PF: > { %v4607_v25 = vld [vmem:[%s5779_s18 + $0x4] ss:$12 sps:$4 sm:$0xff]   ;;  %v4609_v26 = vld [vmem:[%s5779_s18] ss:$12 sps:$4 sm:$0xff]   ;;  %v5209_v27 = vmov 0.0   ;;  %v5210_v53 = vmov 0   ;;  %v1102_v12 = vlaneseq }
 0x27d   : > { %4328 = vmatprep.subr.bf16.mxu1 %v5209_v27  ;;  %v4610_v28 = vld [vmem:[%s5779_s18 + $0x8] ss:$12 sps:$4 sm:$0xff]   ;;  %1245 = vmatprep.subr.bf16.mxu0 %v4607_v25  ;;  %v4613_v38 = vld [vmem:[%s5779_s18 + $0x18] ss:$12 sps:$4 sm:$0xff]   ;;  %v4614_v39 = vld [vmem:[%s5779_s18 + $0x20] ss:$12 sps:$4 sm:$0xff]  }
 0x27e   : > { %v4611_v29 = vld [vmem:[%s5779_s18 + $0x1c] ss:$12 sps:$4 sm:$0xff]   ;;  %1246 = vmatpush1.bf16.msra.mxu0 %v4609_v26  ;;  %4329 = vmatpush3.bf16.msra.mxu1 %v4610_v28  ;;  %v4615_v40 = vld [vmem:[%s5779_s18 + $0x34] ss:$12 sps:$4 sm:$0xff]   ;;  %v4618_v42 = vld [vmem:[%s5779_s18 + $0x38] ss:$12 sps:$4 sm:$0xff]  }
 0x27f   : > { %1247 = vmatprep.subr.bf16.mxu0 %v4611_v29  ;;  %4330 = vmatprep.subr.bf16.mxu1 %v5209_v27  ;;  %v4617_v41 = vld [vmem:[%s5779_s18 + $0x30] ss:$12 sps:$4 sm:$0xff]   ;;  %v4619_v43 = vld [vmem:[%s5779_s18 + $0x4c] ss:$12 sps:$4 sm:$0xff]   ;;  %v4621_v44 = vld [vmem:[%s5779_s18 + $0x48] ss:$12 sps:$4 sm:$0xff]  }
 0x280   : > { %v1024_v23 = vld [vmem:[#allocation2] sm:$0xff]  ;;  %v4623_v46 = vld [vmem:[%s5779_s18 + $0x64] ss:$12 sps:$4 sm:$0xff]   ;;  %v4626_v48 = vld [vmem:[%s5779_s18 + $0x68] ss:$12 sps:$4 sm:$0xff]   ;;  %1277 = vmatprep.mubr.bf16.mxu0 %v5210_v53  ;;  %vm5211_vm1 = vmmov 0  }
 0x281   : > { %1028 = vadd.xlane.f32.xlu0 %v1024_v23  ;;  %v4622_v45 = vld [vmem:[%s5779_s18 + $0x50] ss:$12 sps:$4 sm:$0xff]   ;;  %v4625_v47 = vld [vmem:[%s5779_s18 + $0x60] ss:$12 sps:$4 sm:$0xff]   ;;  %v4629_v50 = vld [vmem:[%s5779_s18 + $0x78] ss:$12 sps:$4 sm:$0xff]   ;;  %4344 = vmatprep.mubr.msk.bf16.mxu1 %vm5211_vm1, %v5209_v27 }
 0x282   : > { %v1025_v24 = vld [vmem:[#allocation2 + $0x8] sm:$0xff]  ;;  %1248 = vmatpush1.bf16.msra.mxu0 %v4613_v38  ;;  %4331 = vmatpush3.bf16.msra.mxu1 %v4614_v39  ;;  %v4630_v51 = vld [vmem:[%s5779_s18 + $0x80] ss:$12 sps:$4 sm:$0xff]   ;;  %v4633_v54 = vld [vmem:[%s5779_s18 + $0x90] ss:$12 sps:$4 sm:$0xff]   ;;  %s6550_s13 = scalar_lea.vmem [#allocation9], %s5770_s24 }
 0x283   : > { %4332 = vmatprep.subr.bf16.mxu1 %v5209_v27  ;;  %1249 = vmatprep.subr.bf16.mxu0 %v4615_v40  ;;  %v4627_v49 = vld [vmem:[%s5779_s18 + $0x7c] ss:$12 sps:$4 sm:$0xff]   ;;  %v4631_v52 = vld [vmem:[%s5779_s18 + $0x94] ss:$12 sps:$4 sm:$0xff]   ;;  %v4634_v55 = vld [vmem:[%s5779_s18 + $0x98] ss:$12 sps:$4 sm:$0xff]  }
 0x284   : > { %v4635_v56 = vld [vmem:[%s5779_s18 + $0xac] ss:$12 sps:$4 sm:$0xff]   ;;  %v4637_v57 = vld [vmem:[%s5779_s18 + $0xa8] ss:$12 sps:$4 sm:$0xff]   ;;  %v4638_v58 = vld [vmem:[%s5779_s18 + $0xb0] ss:$12 sps:$4 sm:$0xff]  }
 0x285   : > { %1030 = vadd.xlane.f32.xlu0 %v1025_v24  ;;  %v4113_v3 = vld [vmem:[%s6550_s13] ss:$0 sm:$0xff]  ;;  %s6551_s22 = scalar_lea.vmem [#allocation11], %s5770_s24  ;;  %v5891_v13 = vshrl.u32 %v1102_v12, 7  ;;  %s5212_s23 = smov 64   ;;  %vm2143_vm2 = vcmask 261120  }
 0x286   : > { %1250 = vmatpush1.bf16.msra.mxu0 %v4617_v41  ;;  %4333 = vmatpush3.bf16.msra.mxu1 %v4618_v42  ;;  %v4114_v7 = vld [vmem:[%s6551_s22] ss:$0 sm:$0xff]  ;;  %s5214_s27 = smov 32   ;;  %v5215_v39 = vmov 1983009808   ;;  %vm2332_vm3 = vcmask 130048  }
 0x287   : > { %4334 = vmatprep.subr.bf16.mxu1 %v5209_v27  ;;  %1251 = vmatprep.subr.bf16.mxu0 %v4619_v43  ;;  %v1104_v14 = vsub.s32 0, %v5891_v13  ;;  %v1112_v15 = vsub.s32 2, %v5891_v13  ;;  %v1100_v16 = vld [vmem:[%s5815_s26] sm:$0x7]  ;;  %v1108_v17 = vsub.s32 1, %v5891_v13  ;;  %s5213_s26 = smov 96   ;;  %v1363_v40 = vunpack.c.l.s4 %v5215_v39 }
 0x288   : > { %v5216_v42 = vmov 1934713408   ;;  %vm2874_vm4 = vcmask 523264   ;;  %vm2877_vm5 = vcmask 785408  }
 0x289   : > { %v1105_v18 = vrot.slane %v1100_v16, %v1104_v14  ;;  %v1113_v19 = vrot.slane %v1100_v16, %v1112_v15  ;;  %v1109_v22 = vrot.slane %v1100_v16, %v1108_v17  ;;  %v1364_v41 = vunpack.c.0.s8 %v1363_v40 }
 0x28a   : > { %1252 = vmatpush1.bf16.msra.mxu0 %v4621_v44  ;;  %4335 = vmatpush3.bf16.msra.mxu1 %v4622_v45  ;;  %v1394_v43 = vunpack.c.l.s4 %v5216_v42  ;;  %v5913_v44 = vpack.i.b16 %v5210_v53, %v5210_v53 }
 0x28b   : > { %4336 = vmatprep.subr.bf16.mxu1 %v5209_v27  ;;  %1253 = vmatprep.subr.bf16.mxu0 %v4623_v46 }
 0x28e   : > { %1254 = vmatpush1.bf16.msra.mxu0 %v4625_v47  ;;  %4337 = vmatpush3.bf16.msra.mxu1 %v4626_v48 }
 0x28f   : > { %1255 = vmatprep.subr.bf16.mxu0 %v4627_v49  ;;  %4338 = vmatprep.subr.bf16.mxu1 %v5209_v27 }
 0x292   : > { %1256 = vmatpush1.bf16.msra.mxu0 %v4629_v50  ;;  %4339 = vmatpush3.bf16.msra.mxu1 %v4630_v51  ;;  %v5916_v50 = vsub.s32 %v1364_v41, %v5891_v13  ;;  %v1395_v51 = vunpack.c.0.s8 %v1394_v43 }
 0x293   : > { %1257 = vmatprep.subr.bf16.mxu0 %v4631_v52  ;;  %4340 = vmatprep.subr.bf16.mxu1 %v5209_v27 }
 0x296   : > { %1258 = vmatpush1.bf16.msra.mxu0 %v4633_v54  ;;  %4341 = vmatpush3.bf16.msra.mxu1 %v4634_v55 }
 0x297   : > { %1259 = vmatprep.subr.bf16.mxu0 %v4635_v56  ;;  %4342 = vmatprep.subr.bf16.mxu1 %v5209_v27 }
 0x29a   : > { %1260 = vmatpush1.bf16.msra.mxu0 %v4637_v57  ;;  %4343 = vmatpush3.bf16.msra.mxu1 %v4638_v58 }
 0x29b   : > { %4348 = vmatprep.subr.bf16.mxu1 %v5209_v27  ;;  %4372 = vmatprep.subr.bf16.mxu0 %v5209_v27 }
 0x30e   : > { %v1029_v30 = vpop.xlane.xlu0 %1028 }
 0x30f   : > { %v1033_v31 = vmul.f32 0.0078125, %v1029_v30 }
 0x311   : > { %v5842_v32 = vsub.f32 %v1024_v23, %v1033_v31 }
 0x312   : > { %v1031_v33 = vpop.xlane.xlu0 %1030 }
 0x313   : > { %v1034_v34 = vmul.f32 0.0078125, %v1031_v33  ;;  %v1037_v35 = vmul.f32 %v5842_v32, %v5842_v32 }
 0x315   : > { %v5846_v36 = vsub.f32 %v1025_v24, %v1034_v34  ;;  %1039 = vadd.xlane.f32.xlu1 %v1037_v35 }
 0x317   : > { %v1038_v37 = vmul.f32 %v5846_v36, %v5846_v36 }
 0x319   : > { %1041 = vadd.xlane.f32.xlu1 %v1038_v37 }
 0x3a2   : > { %v1040_v59 = vpop.xlane.xlu1 %1039 }
 0x3a3   : > { %v1043_v60 = vmul.f32 0.0078125, %v1040_v59 }
 0x3a5   : > { %v1045_v61 = vadd.f32 1e-06, %v1043_v60  ;;  %v5921_v60 = vsub.s32 %v1395_v51, %v5891_v13 }
 0x3a6   : > { %v1042_v62 = vpop.xlane.xlu1 %1041 }
 0x3a7   : > { %4727 = vrsqrt.f32 %v1045_v61  ;;  %v1044_v63 = vmul.f32 0.0078125, %v1042_v62 }
 0x3a9   : > { %v1046_v0 = vadd.f32 1e-06, %v1044_v63 }
 0x3ab   : > { %4729 = vrsqrt.f32 %v1046_v0 }
 0x3b1   : > { %v4728_v1 = vpop.eup %4727 }
 0x3b2   : > { %v1049_v2 = vmul.f32 %v4728_v1, %v5842_v32 }
 0x3b4   : > { %v1057_v6 = vmul.f32 %v4113_v3, %v1049_v2 }
 0x3b5   : > { %v4730_v4 = vpop.eup %4729 }
 0x3b6   : > { %v1050_v5 = vmul.f32 %v4730_v4, %v5846_v36  ;;  %v1065_v9 = vadd.f32 %v4114_v7, %v1057_v6 }
 0x3b8   : > { %v1058_v8 = vmul.f32 %v4113_v3, %v1050_v5 }
 0x3ba   : > { %v1066_v10 = vadd.f32 %v4114_v7, %v1058_v8 }
 0x3bc   : > { %v1067_v11 = vpack.c.bf16 %v1066_v10, %v1065_v9 }
 0x3be   : > { %1278 = vmatmul.mubr.bf16.vlgmr.msra.gmra.mrb[0].mxu0 %v1067_v11  ;;  %4345 = vmatmul.mubr.bf16.vlgmr.msra.gmra.mrb[0].mxu1 %v1067_v11 }
 0x3bf   : > { %4350 = vmatprep.mubr.msk.bf16.mxu1 %vm5211_vm1, %v5209_v27  ;;  %4374 = vmatprep.mubr.msk.bf16.mxu0 %vm5211_vm1, %v5209_v27 }
 0x491   : > { %v1279_v20 = vpop.f32.mrb[0].mxu0  ;;  %v1322_v21 = vpop.f32.mrb[0].mxu1 }
 0x492   : > { %v1281_v23 = vpop.f32.mrb[1].mxu0  ;;  %v4346_v24 = vpop.f32.mrb[1].mxu1  ;;  %v1280_v28 = vadd.f32 %v1279_v20, %v1105_v18  ;;  %v1323_v29 = vadd.f32 %v1322_v21, %v1113_v19 }
 0x493   : > { %v1283_v25 = vpop.f32.mrb[2].mxu0  ;;  %v1325_v26 = vpop.f32.mrb[2].mxu1  ;;  %v1282_v34 = vadd.f32 %v1281_v23, %v1109_v22 }
 0x494   : > { %v1284_v30 = vadd.f32 %v1283_v25, %v1105_v18  ;;  %v1326_v31 = vadd.f32 %v1325_v26, %v1113_v19  ;;  %v1285_v32 = vpop.f32.mrb[3].mxu0  ;;  %v4347_v33 = vpop.f32.mrb[3].mxu1 }
 0x495   : > { %v1286_v35 = vadd.f32 %v1285_v32, %v1109_v22 }
 0x496   : > { %v1329_v36 = vpack.c.bf16 %v1284_v30, %v1280_v28  ;;  %v5903_v37 = vpack.c.bf16 %v1326_v31, %v1323_v29 }
 0x497   : > { %v1330_v38 = vpack.c.bf16 %v1286_v35, %v1282_v34 }
 0x498   : > { %v1343_v4 = vshrl.u32 %v1329_v36, 16 }
 0x499   : > { %1608 = vrot.lane.b32.xlu1 %v1330_v38, %s5212_s23  ;;  %1606 = vrot.lane.b32.xlu0 %v1330_v38, %s5213_s26  ;;  %v1616_v48 = vshrl.u32 %v1330_v38, 16 }
 0x49d   : > { %1610 = vrot.lane.b32.xlu1 %v1330_v38, %s5214_s27  ;;  %1335 = vrot.lane.b32.xlu0 %v1329_v36, %s5212_s23 }
 0x4a1   : > { %1333 = vrot.lane.b32.xlu1 %v1329_v36, %s5213_s26 }
 0x4a5   : > { %1337 = vrot.lane.b32.xlu1 %v1329_v36, %s5214_s27 }
 0x50b   : > { %v1609_v45 = vpop.permute.xlu1 %1608  ;;  %v1607_v46 = vpop.permute.xlu0 %1606 }
 0x50c   : > { %v1614_v47 = vpack.i.b16 %v1607_v46, %v1330_v38  ;;  %v1617_v49 = vshrl.u32 %v1607_v46, 16  ;;  %v1624_v58 = vshrl.u32 %v1609_v45, 16 }
 0x50e   : > { %v1618_v52 = vpack.i.b16 %v1617_v49, %v1616_v48  ;;  %v1628_v54 = vcombine.high %v1614_v47, %v5913_v44  ;;  %v1635_v61 = vrot.slane %v1614_v47, %v5916_v50 }
 0x50f   : > { %v1611_v55 = vpop.permute.xlu1 %1610  ;;  %v1336_v30 = vpop.permute.xlu0 %1335 }
 0x510   : > { %v1694_v56 = vcombine.high %v1618_v52, %v5913_v44  ;;  %v1622_v57 = vpack.i.b16 %v1611_v55, %v1609_v45  ;;  %v1625_v59 = vshrl.u32 %v1611_v55, 16  ;;  %v1642_v0 = vrot.slane %v1628_v54, %v5916_v50 }
 0x511   : > { %v1701_v1 = vrot.slane %v1618_v52, %v5916_v50  ;;  %v1351_v40 = vshrl.u32 %v1336_v30, 16 }
 0x512   : > { %v1643_v62 = vcombine.high %v1622_v57, %v5913_v44  ;;  %v1650_v63 = vrot.slane %v1622_v57, %v5916_v50  ;;  %v1626_v2 = vpack.i.b16 %v1625_v59, %v1624_v58  ;;  %v1708_v5 = vrot.slane %v1694_v56, %v5916_v50 }
 0x513   : > { %v1334_v3 = vpop.permute.xlu1 %1333 }
 0x514   : > { %v1657_v6 = vrot.slane %v1643_v62, %v5916_v50  ;;  %v1658_v7 = vcombine.low %v1635_v61, %v1650_v63  ;;  %v1659_v8 = vcombine.high %v1635_v61, %v1650_v63  ;;  %v1709_v9 = vcombine.high %v1626_v2, %v5913_v44 }
 0x515   : > { %v1716_v10 = vrot.slane %v1626_v2, %v5916_v50  ;;  %v1341_v11 = vpack.i.b16 %v1334_v3, %v1329_v36  ;;  %v1344_v12 = vshrl.u32 %v1334_v3, 16 }
 0x516   : > { %v1666_v16 = vrot.slane %v1658_v7, %v5921_v60  ;;  %v1673_v18 = vrot.slane %v1659_v8, %v5921_v60  ;;  %v1674_v19 = vcombine.low %v1642_v0, %v1657_v6  ;;  %v1675_v20 = vcombine.high %v1642_v0, %v1657_v6 }
 0x517   : > { %v1723_v21 = vrot.slane %v1709_v9, %v5916_v50  ;;  %v1724_v22 = vcombine.low %v1701_v1, %v1716_v10  ;;  %v1725_v23 = vcombine.high %v1701_v1, %v1716_v10  ;;  %v1345_v24 = vpack.i.b16 %v1344_v12, %v1343_v4  ;;  %v1338_v38 = vpop.permute.xlu1 %1337 }
 0x518   : > { %v1682_v25 = vrot.slane %v1674_v19, %v5921_v60  ;;  %v1689_v26 = vrot.slane %v1675_v20, %v5921_v60  ;;  %v1760_v28 = vcombine.low %v1666_v16, %v1673_v18  ;;  %v4143_v29 = vcombine.high %v1666_v16, %v1673_v18 }
 0x519   : > { %v1732_v31 = vrot.slane %v1724_v22, %v5921_v60  ;;  %v1739_v32 = vrot.slane %v1725_v23, %v5921_v60  ;;  %v1740_v33 = vcombine.low %v1708_v5, %v1723_v21  ;;  %v1741_v34 = vcombine.high %v1708_v5, %v1723_v21 }
 0x51a   : > { %v1776_v35 = vcombine.low %v1682_v25, %v1689_v26  ;;  %v4144_v36 = vcombine.high %v1682_v25, %v1689_v26  ;;  %v5940_v39 = vrot.slane %v1760_v28, %v5916_v50  ;;  %v1361_v43 = vcombine.high %v1341_v11, %v5913_v44 }
 0x51b   : > { %v1748_v41 = vrot.slane %v1740_v33, %v5921_v60  ;;  %v1755_v42 = vrot.slane %v1741_v34, %v5921_v60  ;;  %v1427_v45 = vcombine.high %v1345_v24, %v5913_v44  ;;  %v1775_v46 = vrot.slane %v4143_v29, %v5916_v50 }
 0x51c   : > { %v1810_v47 = vcombine.low %v1732_v31, %v1739_v32  ;;  %v1349_v48 = vpack.i.b16 %v1338_v38, %v1336_v30  ;;  %v1352_v49 = vshrl.u32 %v1338_v38, 16  ;;  %v4145_v51 = vcombine.high %v1732_v31, %v1739_v32 }
 0x51d   : > { %v1368_v52 = vrot.slane %v1341_v11, %v5916_v50  ;;  %v1783_v54 = vrot.slane %v1776_v35, %v5916_v50  ;;  %v1791_v55 = vrot.slane %v4144_v36, %v5916_v50  ;;  %v1434_v56 = vrot.slane %v1345_v24, %v5916_v50 }
 0x51e   : > { %v1353_v57 = vpack.i.b16 %v1352_v49, %v1351_v40  ;;  %v1376_v58 = vcombine.high %v1349_v48, %v5913_v44  ;;  %v1383_v59 = vrot.slane %v1349_v48, %v5916_v50  ;;  %v1826_v61 = vcombine.low %v1748_v41, %v1755_v42 }
 0x51f   : > { %v4146_v62 = vcombine.high %v1748_v41, %v1755_v42  ;;  %v1375_v63 = vrot.slane %v1361_v43, %v5916_v50  ;;  %v1441_v0 = vrot.slane %v1427_v45, %v5916_v50  ;;  %v1792_v6 = vcombine.low %v5940_v39, %v1775_v46 }
 0x520   : > { %v1390_v1 = vrot.slane %v1376_v58, %v5916_v50  ;;  %v1391_v2 = vcombine.low %v1368_v52, %v1383_v59  ;;  %v1392_v3 = vcombine.high %v1368_v52, %v1383_v59  ;;  %v1442_v4 = vcombine.high %v1353_v57, %v5913_v44 }
 0x521   : > { %v1449_v5 = vrot.slane %v1353_v57, %v5916_v50  ;;  %v1800_v7 = vcombine.low %v1783_v54, %v1791_v55  ;;  %v1817_v8 = vrot.slane %v1810_v47, %v5916_v50  ;;  %v1825_v20 = vrot.slane %v4145_v51, %v5916_v50 }
 0x522   : > { %v1399_v9 = vrot.slane %v1391_v2, %v5921_v60  ;;  %v1406_v10 = vrot.slane %v1392_v3, %v5921_v60  ;;  %v1407_v11 = vcombine.low %v1375_v63, %v1390_v1  ;;  %v1408_v12 = vcombine.high %v1375_v63, %v1390_v1 }
 0x523   : > { %v1456_v16 = vrot.slane %v1442_v4, %v5916_v50  ;;  %v1457_v18 = vcombine.low %v1434_v56, %v1449_v5  ;;  %v1458_v19 = vcombine.high %v1434_v56, %v1449_v5  ;;  %v1833_v23 = vrot.slane %v1826_v61, %v5916_v50 }
 0x524   : > { %v1415_v21 = vrot.slane %v1407_v11, %v5921_v60  ;;  %v1422_v22 = vrot.slane %v1408_v12, %v5921_v60  ;;  %v1841_v24 = vrot.slane %v4146_v62, %v5916_v50  ;;  %v1493_v30 = vcombine.low %v1399_v9, %v1406_v10 }
 0x525   : > { %v1465_v25 = vrot.slane %v1457_v18, %v5921_v60  ;;  %v1472_v26 = vrot.slane %v1458_v19, %v5921_v60  ;;  %v1473_v28 = vcombine.low %v1441_v0, %v1456_v16  ;;  %v1474_v29 = vcombine.high %v1441_v0, %v1456_v16 }
 0x526   : > { %v4139_v31 = vcombine.high %v1399_v9, %v1406_v10  ;;  %v1509_v32 = vcombine.low %v1415_v21, %v1422_v22  ;;  %v4140_v33 = vcombine.high %v1415_v21, %v1422_v22  ;;  %v1842_v41 = vcombine.low %v1817_v8, %v1825_v20 }
 0x527   : > { %v1481_v34 = vrot.slane %v1473_v28, %v5921_v60  ;;  %v1488_v35 = vrot.slane %v1474_v29, %v5921_v60  ;;  %v1543_v36 = vcombine.low %v1465_v25, %v1472_v26  ;;  %v4141_v38 = vcombine.high %v1465_v25, %v1472_v26 }
 0x528   : > { %v1516_v39 = vrot.slane %v1509_v32, %v5916_v50  ;;  %v1524_v40 = vrot.slane %v4140_v33, %v5916_v50  ;;  %v1500_v47 = vrot.slane %v1493_v30, %v5916_v50  ;;  %v1508_v48 = vrot.slane %v4139_v31, %v5916_v50 }
 0x529   : > { %v1550_v42 = vrot.slane %v1543_v36, %v5916_v50  ;;  %v1558_v43 = vrot.slane %v4141_v38, %v5916_v50  ;;  %v1559_v45 = vcombine.low %v1481_v34, %v1488_v35  ;;  %v4142_v46 = vcombine.high %v1481_v34, %v1488_v35 }
 0x52a   : > { %v1807_v49 = vrot.slane %v1800_v7, %v5921_v60  ;;  %v1850_v51 = vcombine.low %v1833_v23, %v1841_v24  ;;  %v1799_v55 = vrot.slane %v1792_v6, %v5921_v60  ;;  %v1533_v56 = vcombine.low %v1516_v39, %v1524_v40 }
 0x52b   : > { %v1566_v52 = vrot.slane %v1559_v45, %v5916_v50  ;;  %v1574_v54 = vrot.slane %v4142_v46, %v5916_v50  ;;  %v1575_v57 = vcombine.low %v1550_v42, %v1558_v43  ;;  %v1849_v58 = vrot.slane %v1842_v41, %v5921_v60 }
 0x52c   : > { %v1857_v59 = vrot.slane %v1850_v51, %v5921_v60  ;;  %v1525_v62 = vcombine.low %v1500_v47, %v1508_v48  ;;  %v1808_v63 = vcombine.low %v1799_v55, %v1807_v49  ;;  %v1540_v3 = vrot.slane %v1533_v56, %v5921_v60 }
 0x52d   : > { %v1583_v61 = vcombine.low %v1566_v52, %v1574_v54  ;;  %v1582_v4 = vrot.slane %v1575_v57, %v5921_v60  ;;  %v1809_v20 = vcombine.high %v1799_v55, %v1807_v49 }
 0x52e   : > { %v1858_v0 = vcombine.low %v1849_v58, %v1857_v59  ;;  %v1532_v5 = vrot.slane %v1525_v62, %v5921_v60  ;;  %v1863_v10 = vshrl.u32 %v1808_v63, 16  ;;  %v1859_v18 = vcombine.high %v1849_v58, %v1857_v59 }
 0x52f   : > { %v1590_v1 = vrot.slane %v1583_v61, %v5921_v60  ;;  %v1869_v28 = vshrl.u32 %v1809_v20, 16 }
 0x530   : > { %v1862_v2 = vpack.i.b16 %v1858_v0, %v1808_v63  ;;  %v1864_v8 = vshrl.u32 %v1858_v0, 16  ;;  %v1541_v9 = vcombine.low %v1532_v5, %v1540_v3  ;;  %v1868_v22 = vpack.i.b16 %v1859_v18, %v1809_v20 }
 0x531   : > { %v1591_v7 = vcombine.low %v1582_v4, %v1590_v1  ;;  %v1870_v25 = vshrl.u32 %v1859_v18, 16  ;;  %v1592_v26 = vcombine.high %v1582_v4, %v1590_v1  ;;  %v1542_v29 = vcombine.high %v1532_v5, %v1540_v3 }
 0x532   : > { %v2148_v6 = vsel %vm2143_vm2, %v1862_v2, 0  ;;  %v1865_v12 = vpack.i.b16 %v1864_v8, %v1863_v10  ;;  %v1596_v21 = vshrl.u32 %v1541_v9, 16  ;;  %v2242_v24 = vsel %vm2143_vm2, %v1868_v22, 0 }
 0x533   : > { %4349 = vmatpush3.bf16.xpose.msra.mxu1 %v2148_v6  ;;  %v1595_v11 = vpack.i.b16 %v1591_v7, %v1541_v9  ;;  %v1597_v19 = vshrl.u32 %v1591_v7, 16  ;;  %v1871_v30 = vpack.i.b16 %v1870_v25, %v1869_v28  ;;  %v1601_v31 = vpack.i.b16 %v1592_v26, %v1542_v29 }
 0x534   : > { %4354 = vmatprep.subr.bf16.mxu1 %v5209_v27  ;;  %v2195_v16 = vsel %vm2143_vm2, %v1865_v12, 0  ;;  %v1603_v33 = vshrl.u32 %v1592_v26, 16  ;;  %v1602_v34 = vshrl.u32 %v1542_v29, 16 }
 0x535   : > { %v1598_v23 = vpack.i.b16 %v1597_v19, %v1596_v21  ;;  %v2289_v32 = vsel %vm2143_vm2, %v1871_v30, 0 }
 0x536   : > { %v1604_v35 = vpack.i.b16 %v1603_v33, %v1602_v34 }
 0x53a   : > { %4351 = vmatmul.mubr.msk.bf16.vlgmr.msra.gmra.mrb[4].mxu1 %vm2143_vm2, %v1595_v11 }
 0x53b   : > { %4355 = vmatpush3.bf16.xpose.msra.mxu1 %v2195_v16  ;;  %4356 = vmatprep.mubr.msk.bf16.mxu1 %vm5211_vm1, %v5209_v27 }
 0x53c   : > { %4360 = vmatprep.subr.bf16.mxu1 %v5209_v27 }
 0x542   : > { %4357 = vmatmul.mubr.msk.bf16.vlgmr.msra.gmra.mrb[8].mxu1 %vm2143_vm2, %v1598_v23 }
 0x543   : > { %4361 = vmatpush3.bf16.xpose.msra.mxu1 %v2242_v24  ;;  %4362 = vmatprep.mubr.msk.bf16.mxu1 %vm5211_vm1, %v5209_v27 }
 0x544   : > { %4366 = vmatprep.subr.bf16.mxu1 %v5209_v27 }
 0x54a   : > { %4363 = vmatmul.mubr.msk.bf16.vlgmr.msra.gmra.mrb[12].mxu1 %vm2143_vm2, %v1601_v31 }
 0x54b   : > { %4367 = vmatpush3.bf16.xpose.msra.mxu1 %v2289_v32  ;;  %4368 = vmatprep.mubr.msk.bf16.mxu1 %vm5211_vm1, %v5209_v27 }
 0x54c   : > { %4378 = vmatprep.subr.bf16.mxu1 %v5209_v27 }
 0x552   : > { %4369 = vmatmul.mubr.msk.bf16.vlgmr.msra.gmra.mrb[16].mxu1 %vm2143_vm2, %v1604_v35 }
 0x553   : > { %4380 = vmatprep.mubr.msk.bf16.mxu1 %vm5211_vm1, %v5209_v27 }
 0x60d   : > { %v2184_v36 = vpop.f32.mrb[4].mxu1 }
 0x60e   : > { %v4352_v38 = vpop.f32.mrb[5].mxu1  ;;  %v2333_v39 = vsel %vm2332_vm3, %v2184_v36, -inf }
 0x60f   : > { %2334 = vmax.xlane.f32.xlu0 %v2333_v39  ;;  %v2187_v40 = vpop.f32.mrb[6].mxu1 }
 0x610   : > { %v4353_v41 = vpop.f32.mrb[7].mxu1  ;;  %v2336_v42 = vsel %vm2332_vm3, %v2187_v40, -inf }
 0x611   : > { %2337 = vmax.xlane.f32.xlu1 %v2336_v42  ;;  %v1883_v41 = vshrl.u32 %v5903_v37, 16 }
 0x615   : > { %v2231_v43 = vpop.f32.mrb[8].mxu1 }
 0x616   : > { %v4358_v45 = vpop.f32.mrb[9].mxu1  ;;  %v2339_v46 = vsel %vm2332_vm3, %v2231_v43, -inf }
 0x617   : > { %2340 = vmax.xlane.f32.xlu0 %v2339_v46  ;;  %v2234_v47 = vpop.f32.mrb[10].mxu1 }
 0x618   : > { %v4359_v48 = vpop.f32.mrb[11].mxu1  ;;  %v2342_v49 = vsel %vm2332_vm3, %v2234_v47, -inf }
 0x61b   : > { %2343 = vmax.xlane.f32.xlu0 %v2342_v49 }
 0x61d   : > { %v2278_v51 = vpop.f32.mrb[12].mxu1 }
 0x61e   : > { %v4364_v52 = vpop.f32.mrb[13].mxu1  ;;  %v2345_v54 = vsel %vm2332_vm3, %v2278_v51, -inf }
 0x61f   : > { %2346 = vmax.xlane.f32.xlu0 %v2345_v54  ;;  %v2281_v55 = vpop.f32.mrb[14].mxu1 }
 0x620   : > { %v4365_v56 = vpop.f32.mrb[15].mxu1  ;;  %v2348_v57 = vsel %vm2332_vm3, %v2281_v55, -inf }
 0x621   : > { %2349 = vmax.xlane.f32.xlu1 %v2348_v57 }
 0x625   : > { %v2325_v58 = vpop.f32.mrb[16].mxu1 }
 0x626   : > { %v4370_v59 = vpop.f32.mrb[17].mxu1  ;;  %v2351_v61 = vsel %vm2332_vm3, %v2325_v58, -inf }
 0x627   : > { %2352 = vmax.xlane.f32.xlu0 %v2351_v61  ;;  %v2328_v62 = vpop.f32.mrb[18].mxu1 }
 0x628   : > { %v4371_v63 = vpop.f32.mrb[19].mxu1  ;;  %v2354_v0 = vsel %vm2332_vm3, %v2328_v62, -inf }
 0x629   : > { %2355 = vmax.xlane.f32.xlu1 %v2354_v0 }
 0x63a   : > { %1875 = vrot.lane.b32.xlu1 %v5903_v37, %s5212_s23 }
 0x63d   : > { %1873 = vrot.lane.b32.xlu0 %v5903_v37, %s5213_s26 }
 0x63e   : > { %1877 = vrot.lane.b32.xlu1 %v5903_v37, %s5214_s27 }
 0x69c   : > { %v2335_v1 = vpop.xlane.xlu0 %2334 }
 0x69d   : > { %v2357_v2 = vsub.f32 %v2184_v36, %v2335_v1 }
 0x69e   : > { %v2338_v3 = vpop.xlane.xlu1 %2337 }
 0x69f   : > { %v2365_v4 = vmul.f32 1.442695, %v2357_v2  ;;  %v2358_v5 = vsub.f32 %v2187_v40, %v2338_v3 }
 0x6a1   : > { %4731 = vpow2.f32 %v2365_v4  ;;  %v2367_v6 = vmul.f32 1.442695, %v2358_v5 }
 0x6a3   : > { %4733 = vpow2.f32 %v2367_v6 }
 0x6a4   : > { %v2341_v7 = vpop.xlane.xlu0 %2340 }
 0x6a5   : > { %v2359_v8 = vsub.f32 %v2231_v43, %v2341_v7 }
 0x6a7   : > { %v2369_v9 = vmul.f32 1.442695, %v2359_v8 }
 0x6a8   : > { %v2344_v10 = vpop.xlane.xlu0 %2343 }
 0x6a9   : > { %4735 = vpow2.f32 %v2369_v9  ;;  %v2360_v11 = vsub.f32 %v2234_v47, %v2344_v10 }
 0x6ab   : > { %v6022_v12 = vpop.eup %4731  ;;  %v2371_v16 = vmul.f32 1.442695, %v2360_v11 }
 0x6ac   : > { %v2347_v18 = vpop.xlane.xlu0 %2346  ;;  %v2381_v19 = vsel %vm2332_vm3, %v6022_v12, 0.0 }
 0x6ad   : > { %v6026_v20 = vpop.eup %4733  ;;  %4737 = vpow2.f32 %v2371_v16  ;;  %v2361_v21 = vsub.f32 %v2278_v51, %v2347_v18  ;;  %2382 = vadd.xlane.f32.xlu1 %v2381_v19 }
 0x6ae   : > { %v2350_v22 = vpop.xlane.xlu1 %2349  ;;  %v2384_v23 = vsel %vm2332_vm3, %v6026_v20, 0.0 }
 0x6af   : > { %v2373_v24 = vmul.f32 1.442695, %v2361_v21  ;;  %v2362_v25 = vsub.f32 %v2281_v55, %v2350_v22  ;;  %2385 = vadd.xlane.f32.xlu0 %v2384_v23 }
 0x6b1   : > { %4739 = vpow2.f32 %v2373_v24  ;;  %v2375_v26 = vmul.f32 1.442695, %v2362_v25 }
 0x6b3   : > { %v6030_v28 = vpop.eup %4735  ;;  %4741 = vpow2.f32 %v2375_v26 }
 0x6b4   : > { %v2353_v29 = vpop.xlane.xlu0 %2352  ;;  %v2387_v30 = vsel %vm2332_vm3, %v6030_v28, 0.0 }
 0x6b5   : > { %v2363_v31 = vsub.f32 %v2325_v58, %v2353_v29  ;;  %2388 = vadd.xlane.f32.xlu0 %v2387_v30 }
 0x6b6   : > { %v2356_v32 = vpop.xlane.xlu1 %2355 }
 0x6b7   : > { %v6034_v33 = vpop.eup %4737  ;;  %v2377_v34 = vmul.f32 1.442695, %v2363_v31  ;;  %v2364_v35 = vsub.f32 %v2328_v62, %v2356_v32 }
 0x6b8   : > { %v1874_v36 = vpop.permute.xlu0 %1873  ;;  %v2390_v38 = vsel %vm2332_vm3, %v6034_v33, 0.0 }
 0x6b9   : > { %4743 = vpow2.f32 %v2377_v34  ;;  %v2379_v39 = vmul.f32 1.442695, %v2364_v35  ;;  %v1884_v40 = vshrl.u32 %v1874_v36, 16  ;;  %2391 = vadd.xlane.f32.xlu0 %v2390_v38  ;;  %v1881_v42 = vpack.i.b16 %v1874_v36, %v5903_v37 }
 0x6ba   : > { %v1876_v43 = vpop.permute.xlu1 %1875 }
 0x6bb   : > { %v6040_v45 = vpop.eup %4739  ;;  %4745 = vpow2.f32 %v2379_v39  ;;  %v1885_v46 = vpack.i.b16 %v1884_v40, %v1883_v41  ;;  %v1895_v49 = vcombine.high %v1881_v42, %v5913_v44  ;;  %v1891_v54 = vshrl.u32 %v1876_v43, 16 }
 0x6bc   : > { %v2393_v47 = vsel %vm2332_vm3, %v6040_v45, 0.0  ;;  %v1902_v57 = vrot.slane %v1881_v42, %v5916_v50 }
 0x6bd   : > { %v6044_v48 = vpop.eup %4741  ;;  %2394 = vadd.xlane.f32.xlu1 %v2393_v47  ;;  %v1961_v56 = vcombine.high %v1885_v46, %v5913_v44  ;;  %v1909_v62 = vrot.slane %v1895_v49, %v5916_v50  ;;  %v1968_v4 = vrot.slane %v1885_v46, %v5916_v50 }
 0x6be   : > { %v1878_v51 = vpop.permute.xlu1 %1877  ;;  %v2396_v52 = vsel %vm2332_vm3, %v6044_v48, 0.0 }
 0x6bf   : > { %v1889_v55 = vpack.i.b16 %v1878_v51, %v1876_v43  ;;  %v1892_v37 = vshrl.u32 %v1878_v51, 16  ;;  %2397 = vadd.xlane.f32.xlu0 %v2396_v52  ;;  %v1975_v5 = vrot.slane %v1961_v56, %v5916_v50 }
 0x6c1   : > { %v1893_v58 = vpack.i.b16 %v1892_v37, %v1891_v54  ;;  %v1910_v59 = vcombine.high %v1889_v55, %v5913_v44  ;;  %v1917_v61 = vrot.slane %v1889_v55, %v5916_v50 }
 0x6c3   : > { %v6054_v63 = vpop.eup %4743  ;;  %v1924_v0 = vrot.slane %v1910_v59, %v5916_v50  ;;  %v1925_v1 = vcombine.low %v1902_v57, %v1917_v61  ;;  %v1926_v2 = vcombine.high %v1902_v57, %v1917_v61  ;;  %v1976_v3 = vcombine.high %v1893_v58, %v5913_v44 }
 0x6c4   : > { %v1983_v6 = vrot.slane %v1893_v58, %v5916_v50  ;;  %v2399_v7 = vsel %vm2332_vm3, %v6054_v63, 0.0 }
 0x6c5   : > { %v6063_v8 = vpop.eup %4745  ;;  %v1933_v9 = vrot.slane %v1925_v1, %v5921_v60  ;;  %v1940_v10 = vrot.slane %v1926_v2, %v5921_v60  ;;  %v1941_v11 = vcombine.low %v1909_v62, %v1924_v0  ;;  %v1942_v16 = vcombine.high %v1909_v62, %v1924_v0  ;;  %2400 = vadd.xlane.f32.xlu1 %v2399_v7 }
 0x6c6   : > { %v1990_v18 = vrot.slane %v1976_v3, %v5916_v50  ;;  %v1991_v19 = vcombine.low %v1968_v4, %v1983_v6  ;;  %v1992_v21 = vcombine.high %v1968_v4, %v1983_v6  ;;  %v2402_v22 = vsel %vm2332_vm3, %v6063_v8, 0.0 }
 0x6c7   : > { %v1949_v23 = vrot.slane %v1941_v11, %v5921_v60  ;;  %v1956_v24 = vrot.slane %v1942_v16, %v5921_v60  ;;  %v2027_v25 = vcombine.low %v1933_v9, %v1940_v10  ;;  %v4147_v26 = vcombine.high %v1933_v9, %v1940_v10  ;;  %2403 = vadd.xlane.f32.xlu0 %v2402_v22 }
 0x6c8   : > { %v1999_v29 = vrot.slane %v1991_v19, %v5921_v60  ;;  %v2006_v30 = vrot.slane %v1992_v21, %v5921_v60  ;;  %v2007_v31 = vcombine.low %v1975_v5, %v1990_v18  ;;  %v2008_v32 = vcombine.high %v1975_v5, %v1990_v18 }
 0x6c9   : > { %v2034_v34 = vrot.slane %v2027_v25, %v5916_v50  ;;  %v2042_v35 = vrot.slane %v4147_v26, %v5916_v50  ;;  %v2043_v36 = vcombine.low %v1949_v23, %v1956_v24  ;;  %v4148_v38 = vcombine.high %v1949_v23, %v1956_v24 }
 0x6ca   : > { %v2015_v39 = vrot.slane %v2007_v31, %v5921_v60  ;;  %v2022_v40 = vrot.slane %v2008_v32, %v5921_v60  ;;  %v2077_v41 = vcombine.low %v1999_v29, %v2006_v30  ;;  %v4149_v42 = vcombine.high %v1999_v29, %v2006_v30 }
 0x6cb   : > { %v2050_v43 = vrot.slane %v2043_v36, %v5916_v50  ;;  %v2058_v46 = vrot.slane %v4148_v38, %v5916_v50  ;;  %v2059_v47 = vcombine.low %v2034_v34, %v2042_v35 }
 0x6cc   : > { %v2084_v49 = vrot.slane %v2077_v41, %v5916_v50  ;;  %v2092_v51 = vrot.slane %v4149_v42, %v5916_v50  ;;  %v2093_v52 = vcombine.low %v2015_v39, %v2022_v40  ;;  %v4150_v54 = vcombine.high %v2015_v39, %v2022_v40 }
 0x6cd   : > { %v2067_v55 = vcombine.low %v2050_v43, %v2058_v46  ;;  %v2066_v58 = vrot.slane %v2059_v47, %v5921_v60 }
 0x6ce   : > { %v2100_v37 = vrot.slane %v2093_v52, %v5916_v50  ;;  %v2108_v56 = vrot.slane %v4150_v54, %v5916_v50  ;;  %v2109_v57 = vcombine.low %v2084_v49, %v2092_v51  ;;  %v4641_v52 = vld [vmem:[%s5787_s25 + $0x10] sm:$0xff]   ;;  %v4644_v54 = vld [vmem:[%s5787_s25 + $0x28] sm:$0xff]  }
 0x6cf   : > { %v2074_v59 = vrot.slane %v2067_v55, %v5921_v60 }
 0x6d0   : > { %v2117_v61 = vcombine.low %v2100_v37, %v2108_v56  ;;  %v2116_v1 = vrot.slane %v2109_v57, %v5921_v60 }
 0x6d1   : > { %v2075_v62 = vcombine.low %v2066_v58, %v2074_v59  ;;  %v2076_v0 = vcombine.high %v2066_v58, %v2074_v59 }
 0x6d2   : > { %v2124_v2 = vrot.slane %v2117_v61, %v5921_v60 }
 0x6d3   : > { %v2131_v5 = vshrl.u32 %v2075_v62, 16  ;;  %v2139_v6 = vshrl.u32 %v2076_v0, 16 }
 0x6d4   : > { %v2125_v3 = vcombine.low %v2116_v1, %v2124_v2  ;;  %v2126_v4 = vcombine.high %v2116_v1, %v2124_v2 }
 0x6d6   : > { %v2129_v7 = vpack.i.b16 %v2125_v3, %v2075_v62  ;;  %v2132_v9 = vshrl.u32 %v2125_v3, 16  ;;  %v2137_v10 = vpack.i.b16 %v2126_v4, %v2076_v0  ;;  %v2140_v11 = vshrl.u32 %v2126_v4, 16 }
 0x6d8   : > { %4373 = vmatpush3.bf16.msra.mxu0 %v2129_v7  ;;  %v2133_v16 = vpack.i.b16 %v2132_v9, %v2131_v5  ;;  %v2141_v18 = vpack.i.b16 %v2140_v11, %v2139_v6 }
 0x6d9   : > { %4384 = vmatprep.subr.bf16.mxu0 %v5209_v27 }
 0x6da   : > { %4379 = vmatpush3.bf16.msra.mxu1 %v2133_v16 }
 0x6db   : > { %4390 = vmatprep.subr.bf16.mxu1 %v5209_v27 }
 0x73a   : > { %v2383_v19 = vpop.xlane.xlu1 %2382 }
 0x73b   : > { %4747 = vrcp.f32 %v2383_v19 }
 0x73c   : > { %v2386_v21 = vpop.xlane.xlu0 %2385 }
 0x73d   : > { %4749 = vrcp.f32 %v2386_v21 }
 0x742   : > { %v2389_v22 = vpop.xlane.xlu0 %2388 }
 0x743   : > { %4751 = vrcp.f32 %v2389_v22 }
 0x745   : > { %v4748_v23 = vpop.eup %4747 }
 0x746   : > { %v2392_v24 = vpop.xlane.xlu0 %2391  ;;  %v2413_v26 = vmul.f32 %v4748_v23, %v6022_v12 }
 0x747   : > { %v4750_v25 = vpop.eup %4749  ;;  %4753 = vrcp.f32 %v2392_v24 }
 0x748   : > { %v2414_v29 = vmul.f32 %v4750_v25, %v6026_v20 }
 0x74a   : > { %v2395_v30 = vpop.xlane.xlu1 %2394  ;;  %v2421_v31 = vpack.c.bf16 %v2414_v29, %v2413_v26 }
 0x74b   : > { %4755 = vrcp.f32 %v2395_v30 }
 0x74c   : > { %v2398_v32 = vpop.xlane.xlu0 %2397  ;;  %4375 = vmatmul.mubr.msk.bf16.vlgmr.msra.gmra.mrb[4].mxu0 %vm2332_vm3, %v2421_v31 }
 0x74d   : > { %4757 = vrcp.f32 %v2398_v32  ;;  %4385 = vmatpush3.bf16.msra.mxu0 %v2137_v10  ;;  %4386 = vmatprep.mubr.msk.bf16.mxu0 %vm5211_vm1, %v5209_v27  ;;  %v4752_v34 = vpop.eup %4751 }
 0x74e   : > { %4396 = vmatprep.subr.bf16.mxu0 %v5209_v27  ;;  %v2415_v36 = vmul.f32 %v4752_v34, %v6030_v28 }
 0x751   : > { %v4754_v35 = vpop.eup %4753 }
 0x752   : > { %v2416_v12 = vmul.f32 %v4754_v35, %v6034_v33  ;;  %v2401_v20 = vpop.xlane.xlu1 %2400 }
 0x753   : > { %4759 = vrcp.f32 %v2401_v20 }
 0x754   : > { %v2404_v38 = vpop.xlane.xlu0 %2403  ;;  %v2422_v39 = vpack.c.bf16 %v2416_v12, %v2415_v36 }
 0x755   : > { %v4756_v40 = vpop.eup %4755  ;;  %4761 = vrcp.f32 %v2404_v38 }
 0x756   : > { %4381 = vmatmul.mubr.msk.bf16.vlgmr.msra.gmra.mrb[20].mxu1 %vm2332_vm3, %v2422_v39  ;;  %v2417_v42 = vmul.f32 %v4756_v40, %v6040_v45  ;;  %v4639_v45 = vld [vmem:[%s5787_s25] sm:$0xff]  }
 0x757   : > { %v4758_v41 = vpop.eup %4757  ;;  %4391 = vmatpush3.bf16.msra.mxu1 %v2141_v18  ;;  %4392 = vmatprep.mubr.msk.bf16.mxu1 %vm5211_vm1, %v5209_v27 }
 0x758   : > { %v2418_v28 = vmul.f32 %v4758_v41, %v6044_v48  ;;  %v4640_v48 = vld [vmem:[%s5787_s25 + $0x8] sm:$0xff]  }
 0x75a   : > { %v2423_v33 = vpack.c.bf16 %v2418_v28, %v2417_v42 }
 0x75c   : > { %4387 = vmatmul.mubr.msk.bf16.vlgmr.msra.gmra.mrb[8].mxu0 %vm2332_vm3, %v2423_v33 }
 0x75d   : > { %v4760_v43 = vpop.eup %4759  ;;  %4412 = vmatprep.mubr.msk.bf16.mxu0 %vm5211_vm1, %v5209_v27  ;;  %4397 = vmatpush3.bf16.msra.mxu0 %v4639_v45 }
 0x75e   : > { %v2419_v47 = vmul.f32 %v4760_v43, %v6054_v63  ;;  %4398 = vmatprep.subr.bf16.mxu0 %v5209_v27  ;;  %v4642_v63 = vld [vmem:[%s5787_s25 + $0x18] sm:$0xff]  }
 0x75f   : > { %v4762_v46 = vpop.eup %4761 }
 0x760   : > { %v2420_v49 = vmul.f32 %v4762_v46, %v6063_v8  ;;  %v4643_v8 = vld [vmem:[%s5787_s25 + $0x20] sm:$0xff]  }
 0x761   : > { %4399 = vmatpush3.bf16.msra.mxu0 %v4640_v48 }
 0x762   : > { %v2424_v51 = vpack.c.bf16 %v2420_v49, %v2419_v47  ;;  %4400 = vmatprep.subr.bf16.mxu0 %v5209_v27 }
 0x764   : > { %4393 = vmatmul.mubr.msk.bf16.vlgmr.msra.gmra.mrb[24].mxu1 %vm2332_vm3, %v2424_v51 }
 0x765   : > { %3282 = vmatprep.mubr.bf16.mxu1 %v5210_v53  ;;  %4401 = vmatpush3.bf16.msra.mxu0 %v4641_v52 }
 0x766   : > { %4402 = vmatprep.subr.bf16.mxu0 %v5209_v27 }
 0x769   : > { %4403 = vmatpush3.bf16.msra.mxu0 %v4642_v63 }
 0x76a   : > { %4404 = vmatprep.subr.bf16.mxu0 %v5209_v27 }
 0x76d   : > { %4405 = vmatpush3.bf16.msra.mxu0 %v4643_v8 }
 0x76e   : > { %4406 = vmatprep.subr.bf16.mxu0 %v5209_v27 }
 0x771   : > { %4407 = vmatpush3.bf16.msra.mxu0 %v4644_v54 }
 0x772   : > { %4408 = vmatprep.subr.bf16.mxu0 %v5209_v27 }
 0x81f   : > { %v2462_v55 = vpop.f32.mrb[4].mxu0 }
 0x820   : > { %v4376_v37 = vpop.f32.mrb[5].mxu0 }
 0x821   : > { %v2465_v56 = vpop.f32.mrb[6].mxu0 }
 0x822   : > { %v2601_v57 = vpack.c.bf16 %v2465_v56, %v2462_v55  ;;  %v4377_v58 = vpop.f32.mrb[7].mxu0 }
 0x823   : > { %v4645_v58 = vld [vmem:[%s5787_s25 + $0x30] sm:$0xff]  }
 0x824   : > { %v2609_v2 = vshrl.u32 %v2601_v57, 16  ;;  %4409 = vmatpush3.bf16.msra.mxu0 %v4645_v58 }
 0x825   : > { %4410 = vmatprep.subr.bf16.mxu0 %v5209_v27 }
 0x829   : > { %v2506_v59 = vpop.f32.mrb[20].mxu1 }
 0x82a   : > { %v4382_v61 = vpop.f32.mrb[21].mxu1 }
 0x82b   : > { %v2509_v62 = vpop.f32.mrb[22].mxu1 }
 0x82c   : > { %v2602_v0 = vpack.c.bf16 %v2509_v62, %v2506_v59  ;;  %v4383_v1 = vpop.f32.mrb[23].mxu1 }
 0x82e   : > { %v2607_v3 = vpack.i.b16 %v2602_v0, %v2601_v57  ;;  %v2610_v4 = vshrl.u32 %v2602_v0, 16 }
 0x82f   : > { %v2550_v5 = vpop.f32.mrb[8].mxu0 }
 0x830   : > { %v2611_v6 = vpack.i.b16 %v2610_v4, %v2609_v2  ;;  %v4388_v7 = vpop.f32.mrb[9].mxu0  ;;  %v2621_v23 = vcombine.high %v2607_v3, %v5913_v44  ;;  %v2628_v29 = vrot.slane %v2607_v3, %v5916_v50 }
 0x831   : > { %v2553_v9 = vpop.f32.mrb[10].mxu0 }
 0x832   : > { %v2603_v10 = vpack.c.bf16 %v2553_v9, %v2550_v5  ;;  %v4389_v11 = vpop.f32.mrb[11].mxu0  ;;  %v2635_v34 = vrot.slane %v2621_v23, %v5916_v50  ;;  %v2687_v35 = vcombine.high %v2611_v6, %v5913_v44  ;;  %v2694_v39 = vrot.slane %v2611_v6, %v5916_v50 }
 0x834   : > { %v2617_v24 = vshrl.u32 %v2603_v10, 16  ;;  %v2701_v43 = vrot.slane %v2687_v35, %v5916_v50 }
 0x837   : > { %v2594_v16 = vpop.f32.mrb[24].mxu1 }
 0x838   : > { %v4394_v18 = vpop.f32.mrb[25].mxu1 }
 0x839   : > { %v2597_v19 = vpop.f32.mrb[26].mxu1 }
 0x83a   : > { %v2604_v21 = vpack.c.bf16 %v2597_v19, %v2594_v16  ;;  %v4395_v22 = vpop.f32.mrb[27].mxu1 }
 0x83c   : > { %v2615_v25 = vpack.i.b16 %v2604_v21, %v2603_v10  ;;  %v2618_v26 = vshrl.u32 %v2604_v21, 16  ;;  %v4646_v10 = vld [vmem:[%s5787_s25 + $0x38] sm:$0xff]  }
 0x83d   : > { %4411 = vmatpush3.bf16.msra.mxu0 %v4646_v10  ;;  %v4665_v10 = vld [vmem:[%s5789_s7 + $0x60] ss:$16 sps:$4 sm:$0xff]  }
 0x83e   : > { %v2619_v30 = vpack.i.b16 %v2618_v26, %v2617_v24  ;;  %v2636_v31 = vcombine.high %v2615_v25, %v5913_v44  ;;  %v2643_v32 = vrot.slane %v2615_v25, %v5916_v50 }
 0x840   : > { %v2650_v36 = vrot.slane %v2636_v31, %v5916_v50  ;;  %v2651_v12 = vcombine.low %v2628_v29, %v2643_v32  ;;  %v2652_v20 = vcombine.high %v2628_v29, %v2643_v32  ;;  %v2702_v38 = vcombine.high %v2619_v30, %v5913_v44 }
 0x841   : > { %v2709_v40 = vrot.slane %v2619_v30, %v5916_v50 }
 0x842   : > { %v2659_v41 = vrot.slane %v2651_v12, %v5921_v60  ;;  %v2666_v42 = vrot.slane %v2652_v20, %v5921_v60  ;;  %v2667_v28 = vcombine.low %v2635_v34, %v2650_v36  ;;  %v2668_v33 = vcombine.high %v2635_v34, %v2650_v36 }
 0x843   : > { %v2716_v46 = vrot.slane %v2702_v38, %v5916_v50  ;;  %v2717_v47 = vcombine.low %v2694_v39, %v2709_v40  ;;  %v2718_v49 = vcombine.high %v2694_v39, %v2709_v40 }
 0x844   : > { %v2675_v51 = vrot.slane %v2667_v28, %v5921_v60  ;;  %v2682_v44 = vrot.slane %v2668_v33, %v5921_v60  ;;  %v2753_v45 = vcombine.low %v2659_v41, %v2666_v42  ;;  %v4159_v48 = vcombine.high %v2659_v41, %v2666_v42  ;;  %v4163_v42 = vld [vmem:[%s849_s19] ss:$0 sm:$0xff] }
 0x845   : > { %v2725_v52 = vrot.slane %v2717_v47, %v5921_v60  ;;  %v2732_v63 = vrot.slane %v2718_v49, %v5921_v60  ;;  %v2733_v8 = vcombine.low %v2701_v43, %v2716_v46  ;;  %v2734_v54 = vcombine.high %v2701_v43, %v2716_v46  ;;  %v4783_v47 = vld [vmem:[#allocation2] sm:$0xff] }
 0x846   : > { %v2769_v55 = vcombine.low %v2675_v51, %v2682_v44  ;;  %v4160_v37 = vcombine.high %v2675_v51, %v2682_v44  ;;  %v2760_v56 = vrot.slane %v2753_v45, %v5916_v50  ;;  %v2768_v57 = vrot.slane %v4159_v48, %v5916_v50  ;;  %v4647_v48 = vld [vmem:[%s5789_s7] ss:$16 sps:$4 sm:$0xff]  }
 0x847   : > { %v2741_v59 = vrot.slane %v2733_v8, %v5921_v60  ;;  %v2748_v61 = vrot.slane %v2734_v54, %v5921_v60  ;;  %v2803_v62 = vcombine.low %v2725_v52, %v2732_v63  ;;  %v4161_v0 = vcombine.high %v2725_v52, %v2732_v63  ;;  %v4649_v52 = vld [vmem:[%s5789_s7 + $0x4] ss:$16 sps:$4 sm:$0xff]   ;;  %v4650_v63 = vld [vmem:[%s5789_s7 + $0x8] ss:$16 sps:$4 sm:$0xff]   ;;  %v4652_v8 = vld [vmem:[%s5789_s7 + $0xc] ss:$16 sps:$4 sm:$0xff]  }
 0x848   : > { %v2776_v1 = vrot.slane %v2769_v55, %v5916_v50  ;;  %v2784_v2 = vrot.slane %v4160_v37, %v5916_v50  ;;  %v2785_v3 = vcombine.low %v2760_v56, %v2768_v57  ;;  %v4655_v54 = vld [vmem:[%s5789_s7 + $0x24] ss:$16 sps:$4 sm:$0xff]   ;;  %3250 = vmatprep.subr.bf16.mxu1 %v4649_v52  ;;  %v4658_v55 = vld [vmem:[%s5789_s7 + $0x2c] ss:$16 sps:$4 sm:$0xff]   ;;  %3293 = vmatprep.subr.bf16.mxu0 %v4652_v8  ;;  %v4653_v37 = vld [vmem:[%s5789_s7 + $0x20] ss:$16 sps:$4 sm:$0xff]  }
 0x849   : > { %v2810_v4 = vrot.slane %v2803_v62, %v5916_v50  ;;  %v2818_v5 = vrot.slane %v4161_v0, %v5916_v50  ;;  %v2819_v6 = vcombine.low %v2741_v59, %v2748_v61  ;;  %v4162_v7 = vcombine.high %v2741_v59, %v2748_v61  ;;  %3251 = vmatpush1.bf16.msra.mxu1 %v4647_v48  ;;  %v4656_v56 = vld [vmem:[%s5789_s7 + $0x28] ss:$16 sps:$4 sm:$0xff]   ;;  %v4696_v48 = vld [vmem:[%s5827_s8 + $0xc0] sm:$0xff]  }
 0x84a   : > { %v2793_v9 = vcombine.low %v2776_v1, %v2784_v2  ;;  %v2792_v19 = vrot.slane %v2785_v3, %v5921_v60  ;;  %3252 = vmatprep.subr.bf16.mxu1 %v4655_v54  ;;  %v4661_v3 = vld [vmem:[%s5789_s7 + $0x44] ss:$16 sps:$4 sm:$0xff]   ;;  %v4699_v8 = vld [vmem:[%s5827_s8 + $0x48] sm:$0xff]  }
 0x84b   : > { %v2826_v11 = vrot.slane %v2819_v6, %v5916_v50  ;;  %v2834_v16 = vrot.slane %v4162_v7, %v5916_v50  ;;  %v2835_v18 = vcombine.low %v2810_v4, %v2818_v5  ;;  %v4664_v4 = vld [vmem:[%s5789_s7 + $0x4c] ss:$16 sps:$4 sm:$0xff]   ;;  %v4659_v5 = vld [vmem:[%s5789_s7 + $0x40] ss:$16 sps:$4 sm:$0xff]   ;;  %v4662_v6 = vld [vmem:[%s5789_s7 + $0x48] ss:$16 sps:$4 sm:$0xff]  }
 0x84c   : > { %v2800_v21 = vrot.slane %v2793_v9, %v5921_v60  ;;  %v4667_v7 = vld [vmem:[%s5789_s7 + $0x64] ss:$16 sps:$4 sm:$0xff]   ;;  %v4670_v9 = vld [vmem:[%s5789_s7 + $0x6c] ss:$16 sps:$4 sm:$0xff]  }
 0x84d   : > { %v2843_v22 = vcombine.low %v2826_v11, %v2834_v16  ;;  %v2842_v25 = vrot.slane %v2835_v18, %v5921_v60  ;;  %3253 = vmatpush1.bf16.msra.mxu1 %v4653_v37  ;;  %v4668_v11 = vld [vmem:[%s5789_s7 + $0x68] ss:$16 sps:$4 sm:$0xff]   ;;  %v4673_v16 = vld [vmem:[%s5789_s7 + $0x84] ss:$16 sps:$4 sm:$0xff]   ;;  %v4676_v18 = vld [vmem:[%s5789_s7 + $0x8c] ss:$16 sps:$4 sm:$0xff]  }
 0x84e   : > { %v2802_v23 = vcombine.high %v2792_v19, %v2800_v21  ;;  %v2801_v24 = vcombine.low %v2792_v19, %v2800_v21  ;;  %3254 = vmatprep.subr.bf16.mxu1 %v4661_v3  ;;  %v4671_v19 = vld [vmem:[%s5789_s7 + $0x80] ss:$16 sps:$4 sm:$0xff]   ;;  %v4674_v21 = vld [vmem:[%s5789_s7 + $0x88] ss:$16 sps:$4 sm:$0xff]  }
 0x84f   : > { %v2850_v26 = vrot.slane %v2843_v22, %v5921_v60  ;;  %v4679_v22 = vld [vmem:[%s5789_s7 + $0xa4] ss:$16 sps:$4 sm:$0xff]   ;;  %v4700_v54 = vld [vmem:[%s5827_s8 + $0xc8] sm:$0xff]  }
 0x850   : > { %v2856_v30 = vshrl.u32 %v2801_v24, 16  ;;  %v2862_v31 = vshrl.u32 %v2802_v23, 16  ;;  %v4697_v52 = vld [vmem:[%s5827_s8] sm:$0xff]   ;;  %v4702_v37 = vld [vmem:[%s5827_s8 + $0x88] sm:$0xff]  }
 0x851   : > { %v2852_v27 = vcombine.high %v2842_v25, %v2850_v26  ;;  %v2851_v29 = vcombine.low %v2842_v25, %v2850_v26  ;;  %3255 = vmatpush1.bf16.msra.mxu1 %v4659_v5  ;;  %v4680_v25 = vld [vmem:[%s5789_s7 + $0xa8] ss:$16 sps:$4 sm:$0xff]   ;;  %v4685_v26 = vld [vmem:[%s5789_s7 + $0xc4] ss:$16 sps:$4 sm:$0xff]  }
 0x852   : > { %3256 = vmatprep.subr.bf16.mxu1 %v4667_v7  ;;  %v4712_v3 = vld [vmem:[%s5827_s8 + $0xe0] sm:$0xff]   ;;  %v4716_v7 = vld [vmem:[%s5827_s8 + $0xe8] sm:$0xff]  }
 0x853   : > { %v2861_v32 = vpack.i.b16 %v2852_v27, %v2802_v23  ;;  %v2857_v34 = vshrl.u32 %v2851_v29, 16  ;;  %v2863_v50 = vshrl.u32 %v2852_v27, 16  ;;  %v2855_v35 = vpack.i.b16 %v2851_v29, %v2801_v24  ;;  %v4682_v23 = vld [vmem:[%s5789_s7 + $0xac] ss:$16 sps:$4 sm:$0xff]   ;;  %v4677_v24 = vld [vmem:[%s5789_s7 + $0xa0] ss:$16 sps:$4 sm:$0xff]  }
 0x854   : > { %v4688_v27 = vld [vmem:[%s5789_s7 + $0xcc] ss:$16 sps:$4 sm:$0xff]   ;;  %v4683_v29 = vld [vmem:[%s5789_s7 + $0xc0] ss:$16 sps:$4 sm:$0xff]  }
 0x855   : > { %2867 = vrot.lane.b32.xlu0 %v2861_v32, %s5212_s23  ;;  %v2858_v36 = vpack.i.b16 %v2857_v34, %v2856_v30  ;;  %v2864_v12 = vpack.i.b16 %v2863_v50, %v2862_v31  ;;  %3257 = vmatpush1.bf16.msra.mxu1 %v4665_v10  ;;  %v4686_v30 = vld [vmem:[%s5789_s7 + $0xc8] ss:$16 sps:$4 sm:$0xff]   ;;  %v4691_v31 = vld [vmem:[%s5789_s7 + $0xe4] ss:$16 sps:$4 sm:$0xff]   ;;  %v4689_v32 = vld [vmem:[%s5789_s7 + $0xe0] ss:$16 sps:$4 sm:$0xff]  }
 0x856   : > { %3258 = vmatprep.subr.bf16.mxu1 %v4673_v16  ;;  %v4692_v34 = vld [vmem:[%s5789_s7 + $0xe8] ss:$16 sps:$4 sm:$0xff]   ;;  %v4694_v50 = vld [vmem:[%s5789_s7 + $0xec] ss:$16 sps:$4 sm:$0xff]   ;;  %v4714_v5 = vld [vmem:[%s5827_s8 + $0xa0] sm:$0xff]   ;;  %s6556_s7 = sld [smem:[#allocation30_spill]] }
 0x857   : > { %2865 = vrot.lane.b32.xlu1 %v2858_v36, %s5214_s27  ;;  %v4718_v10 = vld [vmem:[%s5827_s8 + $0xa8] sm:$0xff]   ;;  %v4720_v16 = vld [vmem:[%s5827_s8 + $0xf0] sm:$0xff]  }
 0x859   : > { %3259 = vmatpush1.bf16.msra.mxu1 %v4671_v19  ;;  %v4722_v19 = vld [vmem:[%s5827_s8 + $0xb0] sm:$0xff]  }
 0x85a   : > { %3260 = vmatprep.subr.bf16.mxu1 %v4679_v22  ;;  %v4724_v22 = vld [vmem:[%s5827_s8 + $0xf8] sm:$0xff]  }
 0x85b   : > { %2869 = vrot.lane.b32.xlu1 %v2864_v12, %s5213_s26 }
 0x85c   : > { %p4239_p12 = scmp.ne.s32.totalorder %s6556_s7, 1 }
 0x85d   : > { %3261 = vmatpush1.bf16.msra.mxu1 %v4677_v24  ;;  %v4726_v24 = vld [vmem:[%s5827_s8 + $0xb8] sm:$0xff]  }
 0x85e   : > { %3262 = vmatprep.subr.bf16.mxu1 %v4685_v26  ;;  %v3084_v26 = vsub.s32 3, %v5891_v13 }
 0x861   : > { %3263 = vmatpush1.bf16.msra.mxu1 %v4683_v29 }
 0x862   : > { %3264 = vmatprep.subr.bf16.mxu1 %v4691_v31 }
 0x865   : > { %3265 = vmatpush1.bf16.msra.mxu1 %v4689_v32 }
 0x8c7   : > { %v2868_v38 = vpop.permute.xlu0 %2867 }
 0x8c9   : > { %v2866_v20 = vpop.permute.xlu1 %2865 }
 0x8ca   : > { %v2873_v60 = vsel %vm2143_vm2, %v2855_v35, %v2866_v20 }
 0x8cb   : > { %v2876_v40 = vsel %vm2874_vm4, %v2873_v60, %v2868_v38 }
 0x8cd   : > { %v2870_v39 = vpop.permute.xlu1 %2869 }
 0x8ce   : > { %v2879_v41 = vsel %vm2877_vm5, %v2876_v40, %v2870_v39  ;;  %v4172_v40 = vld [vmem:[%s852_s12] ss:$0 sm:$0xff] }
 0x8cf   : > { %4413 = vmatmul.mubr.bf16.vlgmr.msra.gmra.mrb[12].mxu0 %v2879_v41 }
 0x8d0   : > { %3325 = vmatprep.mubr.bf16.mxu0 %v5210_v53  ;;  %v4784_v53 = vld [vmem:[#allocation2 + $0x8] sm:$0xff]  ;;  %3294 = vmatpush1.bf16.msra.mxu0 %v4650_v63 }
 0x8d1   : > { %3295 = vmatprep.subr.bf16.mxu0 %v4658_v55  ;;  %v4698_v63 = vld [vmem:[%s5827_s8 + $0x80] sm:$0xff]   ;;  %v4701_v55 = vld [vmem:[%s5827_s8 + $0x8] sm:$0xff]  }
 0x8d4   : > { %3296 = vmatpush1.bf16.msra.mxu0 %v4656_v56  ;;  %v4703_v56 = vld [vmem:[%s5827_s8 + $0x50] sm:$0xff]  }
 0x8d5   : > { %3297 = vmatprep.subr.bf16.mxu0 %v4664_v4  ;;  %v4713_v4 = vld [vmem:[%s5827_s8 + $0x20] sm:$0xff]  }
 0x8d8   : > { %3298 = vmatpush1.bf16.msra.mxu0 %v4662_v6  ;;  %v4715_v6 = vld [vmem:[%s5827_s8 + $0x68] sm:$0xff]  }
 0x8d9   : > { %3299 = vmatprep.subr.bf16.mxu0 %v4670_v9  ;;  %v4717_v9 = vld [vmem:[%s5827_s8 + $0x28] sm:$0xff]  }
 0x8dc   : > { %3300 = vmatpush1.bf16.msra.mxu0 %v4668_v11  ;;  %v4719_v11 = vld [vmem:[%s5827_s8 + $0x70] sm:$0xff]  }
 0x8dd   : > { %3301 = vmatprep.subr.bf16.mxu0 %v4676_v18  ;;  %v4721_v18 = vld [vmem:[%s5827_s8 + $0x30] sm:$0xff]  }
 0x8e0   : > { %3302 = vmatpush1.bf16.msra.mxu0 %v4674_v21  ;;  %v4723_v21 = vld [vmem:[%s5827_s8 + $0x78] sm:$0xff]  }
 0x8e1   : > { %3303 = vmatprep.subr.bf16.mxu0 %v4682_v23  ;;  %v4725_v23 = vld [vmem:[%s5827_s8 + $0x38] sm:$0xff]  }
 0x8e4   : > { %3304 = vmatpush1.bf16.msra.mxu0 %v4680_v25  ;;  %v3068_v25 = vld [vmem:[%s5821_s30] sm:$0xf] }
 0x8e5   : > { %3305 = vmatprep.subr.bf16.mxu0 %v4688_v27  ;;  %v3073_v27 = vrot.slane %v3068_v25, %v1104_v14  ;;  %v3081_v29 = vrot.slane %v3068_v25, %v1112_v15  ;;  %v3085_v31 = vrot.slane %v3068_v25, %v3084_v26 }
 0x8e8   : > { %3306 = vmatpush1.bf16.msra.mxu0 %v4686_v30  ;;  %v3077_v30 = vrot.slane %v3068_v25, %v1108_v17 }
 0x8e9   : > { %3307 = vmatprep.subr.bf16.mxu0 %v4694_v50 }
 0x8ec   : > { %3308 = vmatpush1.bf16.msra.mxu0 %v4692_v34 }
 0x8ed   : > { %4306 = vmatprep.subr.bf16.mxu0 %v4696_v48 }
 0x9a2   : > { %v2986_v28 = vpop.f32.mrb[12].mxu0 }
 0x9a3   : > { %v2987_v33 = vadd.f32 %v4163_v42, %v2986_v28  ;;  %v4414_v43 = vpop.f32.mrb[13].mxu0 }
 0x9a4   : > { %v2989_v46 = vpop.f32.mrb[14].mxu0  ;;  %v4173_v43 = vld [vmem:[%s855_s4] ss:$0 sm:$0xff] }
 0x9a5   : > { %v6167_v49 = vadd.f32 %v4783_v47, %v2987_v33  ;;  %v2990_v51 = vadd.f32 %v4163_v42, %v2989_v46  ;;  %v4415_v44 = vpop.f32.mrb[15].mxu0 }
 0x9a7   : > { %v6169_v45 = vadd.f32 %v4784_v53, %v2990_v51  ;;  %2997 = vadd.xlane.f32.xlu1 %v6167_v49  ;;  %v4695_v53 = vld [vmem:[%s5827_s8 + $0x40] sm:$0xff]  }
 0x9a8   : > { %4284 = vmatprep.subr.bf16.mxu1 %v4695_v53 }
 0x9a9   : > { %2999 = vadd.xlane.f32.xlu0 %v6169_v45 }
 0xa34   : > { %v2998_v57 = vpop.xlane.xlu1 %2997 }
 0xa35   : > { %v3001_v58 = vmul.f32 0.0078125, %v2998_v57  ;;  %v4704_v57 = vld [vmem:[%s5827_s8 + $0xd0] sm:$0xff]  }
 0xa36   : > { %v3000_v59 = vpop.xlane.xlu0 %2999 }
 0xa37   : > { %v6182_v61 = vsub.f32 %v6167_v49, %v3001_v58  ;;  %v3002_v62 = vmul.f32 0.0078125, %v3000_v59  ;;  %v4705_v58 = vld [vmem:[%s5827_s8 + $0x10] sm:$0xff]  }
 0xa38   : > { %v4706_v59 = vld [vmem:[%s5827_s8 + $0x90] sm:$0xff]  }
 0xa39   : > { %v6185_v0 = vsub.f32 %v6169_v45, %v3002_v62  ;;  %v3005_v1 = vmul.f32 %v6182_v61, %v6182_v61  ;;  %v4708_v62 = vld [vmem:[%s5827_s8 + $0xd8] sm:$0xff]  }
 0xa3b   : > { %3007 = vadd.xlane.f32.xlu0 %v3005_v1  ;;  %v3006_v2 = vmul.f32 %v6185_v0, %v6185_v0  ;;  %v4710_v1 = vld [vmem:[%s5827_s8 + $0x98] sm:$0xff]  }
 0xa3d   : > { %3009 = vadd.xlane.f32.xlu1 %v3006_v2  ;;  %v4711_v2 = vld [vmem:[%s5827_s8 + $0x60] sm:$0xff]  }
 0xac8   : > { %v3008_v35 = vpop.xlane.xlu0 %3007 }
 0xac9   : > { %v3011_v36 = vmul.f32 0.0078125, %v3008_v35 }
 0xaca   : > { %v3010_v12 = vpop.xlane.xlu1 %3009 }
 0xacb   : > { %v3013_v20 = vadd.f32 1e-06, %v3011_v36  ;;  %v3012_v60 = vmul.f32 0.0078125, %v3010_v12 }
 0xacd   : > { %4763 = vrsqrt.f32 %v3013_v20  ;;  %v3014_v38 = vadd.f32 1e-06, %v3012_v60 }
 0xacf   : > { %4765 = vrsqrt.f32 %v3014_v38 }
 0xad7   : > { %v4764_v39 = vpop.eup %4763 }
 0xad8   : > { %v3017_v41 = vmul.f32 %v4764_v39, %v6182_v61  ;;  %v4707_v61 = vld [vmem:[%s5827_s8 + $0x58] sm:$0xff]  }
 0xad9   : > { %v4766_v42 = vpop.eup %4765 }
 0xada   : > { %v3018_v28 = vmul.f32 %v4766_v42, %v6185_v0  ;;  %v3025_v33 = vmul.f32 %v4172_v40, %v3017_v41  ;;  %v4709_v0 = vld [vmem:[%s5827_s8 + $0x18] sm:$0xff]  }
 0xadc   : > { %v3026_v46 = vmul.f32 %v4172_v40, %v3018_v28  ;;  %v3033_v47 = vadd.f32 %v4173_v43, %v3025_v33 }
 0xade   : > { %v3034_v51 = vadd.f32 %v4173_v43, %v3026_v46 }
 0xae0   : > { %v3035_v44 = vpack.c.bf16 %v3034_v51, %v3033_v47 }
 0xae2   : > { %3283 = vmatmul.mubr.bf16.vlgmr.msra.gmra.mrb[28].mxu1 %v3035_v44  ;;  %3326 = vmatmul.mubr.bf16.vlgmr.msra.gmra.mrb[16].mxu0 %v3035_v44 }
 0xae3   : > { %4285 = vmatpush3.bf16.msra.mxu1 %v4697_v52  ;;  %4307 = vmatpush3.bf16.msra.mxu0 %v4698_v63 }
 0xae4   : > { %4286 = vmatprep.subr.bf16.mxu1 %v4699_v8  ;;  %4308 = vmatprep.subr.bf16.mxu0 %v4700_v54 }
 0xae7   : > { %4287 = vmatpush3.bf16.msra.mxu1 %v4701_v55  ;;  %4309 = vmatpush3.bf16.msra.mxu0 %v4702_v37 }
 0xae8   : > { %4288 = vmatprep.subr.bf16.mxu1 %v4703_v56  ;;  %4310 = vmatprep.subr.bf16.mxu0 %v4704_v57 }
 0xaeb   : > { %4289 = vmatpush3.bf16.msra.mxu1 %v4705_v58  ;;  %4311 = vmatpush3.bf16.msra.mxu0 %v4706_v59 }
 0xaec   : > { %4290 = vmatprep.subr.bf16.mxu1 %v4707_v61  ;;  %4312 = vmatprep.subr.bf16.mxu0 %v4708_v62 }
 0xaef   : > { %4291 = vmatpush3.bf16.msra.mxu1 %v4709_v0  ;;  %4313 = vmatpush3.bf16.msra.mxu0 %v4710_v1 }
 0xaf0   : > { %4292 = vmatprep.subr.bf16.mxu1 %v4711_v2  ;;  %4314 = vmatprep.subr.bf16.mxu0 %v4712_v3 }
 0xaf3   : > { %4293 = vmatpush3.bf16.msra.mxu1 %v4713_v4  ;;  %4315 = vmatpush3.bf16.msra.mxu0 %v4714_v5 }
 0xaf4   : > { %4294 = vmatprep.subr.bf16.mxu1 %v4715_v6  ;;  %4316 = vmatprep.subr.bf16.mxu0 %v4716_v7 }
 0xaf7   : > { %4295 = vmatpush3.bf16.msra.mxu1 %v4717_v9  ;;  %4317 = vmatpush3.bf16.msra.mxu0 %v4718_v10 }
 0xaf8   : > { %4296 = vmatprep.subr.bf16.mxu1 %v4719_v11  ;;  %4318 = vmatprep.subr.bf16.mxu0 %v4720_v16 }
 0xafb   : > { %4297 = vmatpush3.bf16.msra.mxu1 %v4721_v18  ;;  %4319 = vmatpush3.bf16.msra.mxu0 %v4722_v19 }
 0xafc   : > { %4298 = vmatprep.subr.bf16.mxu1 %v4723_v21  ;;  %4320 = vmatprep.subr.bf16.mxu0 %v4724_v22 }
 0xaff   : > { %4299 = vmatpush3.bf16.msra.mxu1 %v4725_v23  ;;  %4321 = vmatpush3.bf16.msra.mxu0 %v4726_v24 }
 0xbb5   : > { %v3284_v32 = vpop.f32.mrb[28].mxu1  ;;  %v3327_v34 = vpop.f32.mrb[16].mxu0 }
 0xbb6   : > { %v6267_v50 = vadd.f32 %v3284_v32, %v3073_v27  ;;  %v6269_v35 = vadd.f32 %v3327_v34, %v3081_v29  ;;  %v3286_v36 = vpop.f32.mrb[29].mxu1  ;;  %v3329_v12 = vpop.f32.mrb[17].mxu0 }
 0xbb7   : > { %v6271_v20 = vadd.f32 %v3286_v36, %v3077_v30  ;;  %v6273_v60 = vadd.f32 %v3329_v12, %v3085_v31  ;;  %v3288_v14 = vpop.f32.mrb[30].mxu1  ;;  %v3331_v38 = vpop.f32.mrb[18].mxu0 }
 0xbb8   : > { %v3344_v15 = vmul.f32 0.044715, %v6267_v50  ;;  %v3346_v13 = vmul.f32 0.044715, %v6269_v35  ;;  %v3289_v17 = vadd.f32 %v3288_v14, %v3073_v27  ;;  %v3332_v39 = vadd.f32 %v3331_v38, %v3081_v29  ;;  %v3290_v40 = vpop.f32.mrb[31].mxu1  ;;  %v3333_v41 = vpop.f32.mrb[19].mxu0 }
 0xbb9   : > { %v3345_v42 = vmul.f32 0.044715, %v6271_v20  ;;  %v3347_v28 = vmul.f32 0.044715, %v6273_v60  ;;  %v6279_v33 = vadd.f32 %v3290_v40, %v3077_v30  ;;  %v6281_v43 = vadd.f32 %v3333_v41, %v3085_v31 }
 0xbba   : > { %v3352_v46 = vmul.f32 %v3344_v15, %v6267_v50  ;;  %v3354_v47 = vmul.f32 %v3346_v13, %v6269_v35  ;;  %v3348_v51 = vmul.f32 0.044715, %v3289_v17  ;;  %v3350_v44 = vmul.f32 0.044715, %v3332_v39 }
 0xbbb   : > { %v3353_v53 = vmul.f32 %v3345_v42, %v6271_v20  ;;  %v3355_v48 = vmul.f32 %v3347_v28, %v6273_v60  ;;  %v3349_v52 = vmul.f32 0.044715, %v6279_v33  ;;  %v3351_v63 = vmul.f32 0.044715, %v6281_v43 }
 0xbbc   : > { %v3360_v8 = vmul.f32 %v3352_v46, %v6267_v50  ;;  %v3362_v54 = vmul.f32 %v3354_v47, %v6269_v35  ;;  %v3356_v55 = vmul.f32 %v3348_v51, %v3289_v17  ;;  %v3358_v37 = vmul.f32 %v3350_v44, %v3332_v39 }
 0xbbd   : > { %v3361_v56 = vmul.f32 %v3353_v53, %v6271_v20  ;;  %v3363_v57 = vmul.f32 %v3355_v48, %v6273_v60  ;;  %v3357_v58 = vmul.f32 %v3349_v52, %v6279_v33  ;;  %v3359_v59 = vmul.f32 %v3351_v63, %v6281_v43 }
 0xbbe   : > { %v3368_v61 = vadd.f32 %v3360_v8, %v6267_v50  ;;  %v3370_v62 = vadd.f32 %v3362_v54, %v6269_v35  ;;  %v3364_v0 = vmul.f32 %v3356_v55, %v3289_v17  ;;  %v3366_v1 = vmul.f32 %v3358_v37, %v3332_v39 }
 0xbbf   : > { %v3365_v2 = vmul.f32 %v3357_v58, %v6279_v33  ;;  %v3367_v3 = vmul.f32 %v3359_v59, %v6281_v43  ;;  %v3369_v9 = vadd.f32 %v3361_v56, %v6271_v20  ;;  %v3371_v18 = vadd.f32 %v3363_v57, %v6273_v60 }
 0xbc0   : > { %v3376_v4 = vmul.f32 0.7978846, %v3368_v61  ;;  %v3378_v5 = vmul.f32 0.7978846, %v3370_v62  ;;  %v3372_v6 = vadd.f32 %v3364_v0, %v3289_v17  ;;  %v3374_v7 = vadd.f32 %v3366_v1, %v3332_v39 }
 0xbc1   : > { %v3373_v10 = vadd.f32 %v3365_v2, %v6279_v33  ;;  %v3377_v19 = vmul.f32 0.7978846, %v3369_v9  ;;  %v3375_v22 = vadd.f32 %v3367_v3, %v6281_v43  ;;  %v3379_v23 = vmul.f32 0.7978846, %v3371_v18 }
 0xbc2   : > { %4767 = vtanh.f32 %v3376_v4  ;;  %v3380_v11 = vmul.f32 0.7978846, %v3372_v6  ;;  %v3382_v16 = vmul.f32 0.7978846, %v3374_v7  ;;  %v3336_v32 = vmul.f32 0.5, %v6267_v50 }
 0xbc3   : > { %4769 = vtanh.f32 %v3378_v5  ;;  %v3381_v21 = vmul.f32 0.7978846, %v3373_v10  ;;  %v3383_v24 = vmul.f32 0.7978846, %v3375_v22  ;;  %v3340_v34 = vmul.f32 0.5, %v3289_v17 }
 0xbc4   : > { %4771 = vtanh.f32 %v3380_v11  ;;  %v3338_v14 = vmul.f32 0.5, %v6269_v35  ;;  %v3342_v38 = vmul.f32 0.5, %v3332_v39  ;;  %v3337_v40 = vmul.f32 0.5, %v6271_v20 }
 0xbc5   : > { %4773 = vtanh.f32 %v3382_v16  ;;  %v3341_v47 = vmul.f32 0.5, %v6279_v33  ;;  %v3339_v17 = vmul.f32 0.5, %v6273_v60  ;;  %v3343_v48 = vmul.f32 0.5, %v6281_v43  ;;  %v4206_v60 = vld [vmem:[%s862_s16] ss:$0 sm:$0xff] }
 0xbc6   : > { %4775 = vtanh.f32 %v3377_v19 }
 0xbc7   : > { %4777 = vtanh.f32 %v3381_v21 }
 0xbc8   : > { %4779 = vtanh.f32 %v3379_v23 }
 0xbc9   : > { %4781 = vtanh.f32 %v3383_v24 }
 0xbcc   : > { %v4768_v25 = vpop.eup %4767 }
 0xbcd   : > { %v4770_v26 = vpop.eup %4769  ;;  %v3392_v27 = vadd.f32 1.0, %v4768_v25 }
 0xbce   : > { %v4772_v29 = vpop.eup %4771  ;;  %v3394_v30 = vadd.f32 1.0, %v4770_v26 }
 0xbcf   : > { %v4774_v31 = vpop.eup %4773  ;;  %v3396_v36 = vadd.f32 1.0, %v4772_v29  ;;  %v3400_v42 = vmul.f32 %v3392_v27, %v3336_v32 }
 0xbd0   : > { %v4776_v12 = vpop.eup %4775  ;;  %v3398_v15 = vadd.f32 1.0, %v4774_v31  ;;  %v3402_v44 = vmul.f32 %v3394_v30, %v3338_v14 }
 0xbd1   : > { %v4778_v13 = vpop.eup %4777  ;;  %v3393_v41 = vadd.f32 1.0, %v4776_v12  ;;  %v3404_v28 = vmul.f32 %v3396_v36, %v3340_v34 }
 0xbd2   : > { %v4780_v46 = vpop.eup %4779  ;;  %v3397_v51 = vadd.f32 1.0, %v4778_v13  ;;  %v3406_v53 = vmul.f32 %v3398_v15, %v3342_v38 }
 0xbd3   : > { %v4782_v50 = vpop.eup %4781  ;;  %v3395_v35 = vadd.f32 1.0, %v4780_v46  ;;  %v3408_v39 = vpack.c.bf16 %v3404_v28, %v3400_v42  ;;  %v3401_v52 = vmul.f32 %v3393_v41, %v3337_v40 }
 0xbd4   : > { %v3405_v63 = vmul.f32 %v3397_v51, %v3341_v47  ;;  %v3399_v20 = vadd.f32 1.0, %v4782_v50  ;;  %v3410_v8 = vpack.c.bf16 %v3406_v53, %v3402_v44 }
 0xbd5   : > { %v3403_v55 = vmul.f32 %v3395_v35, %v3339_v17 }
 0xbd6   : > { %v3409_v54 = vpack.c.bf16 %v3405_v63, %v3401_v52  ;;  %v3407_v37 = vmul.f32 %v3399_v20, %v3343_v48 }
 0xbd8   : > { %3707 = vmatprep.mubr.bf16.mxu1 %v3409_v54  ;;  %v3411_v33 = vpack.c.bf16 %v3407_v37, %v3403_v55 }
 0xbd9   : > { %3708 = vmatmul.mubr.bf16.vlgmr.msra.gmra.mrb[32].mxu1 %v3408_v39 }
 0xbda   : > { %3748 = vmatprep.mubr.bf16.mxu0 %v3411_v33 }
 0xbdb   : > { %3749 = vmatmul.mubr.bf16.vlgmr.msra.gmra.mrb[20].mxu0 %v3410_v8 }
 0xcac   : > { %v4300_v56 = vpop.f32.mrb[32].mxu1 }
 0xcad   : > { %v4301_v43 = vpop.f32.mrb[33].mxu1 }
 0xcae   : > { %v4322_v57 = vpop.f32.mrb[20].mxu0  ;;  %v4302_v58 = vadd.f32 %v4301_v43, %v4300_v56  ;;  %v4303_v59 = vpop.f32.mrb[34].mxu1 }
 0xcaf   : > { %v4323_v61 = vpop.f32.mrb[21].mxu0  ;;  %v4304_v62 = vpop.f32.mrb[35].mxu1 }
 0xcb0   : > { %v3710_v0 = vadd.f32 %v4302_v58, %v4206_v60  ;;  %v4324_v1 = vadd.f32 %v4323_v61, %v4322_v57  ;;  %v4325_v2 = vpop.f32.mrb[22].mxu0  ;;  %v4305_v3 = vadd.f32 %v4304_v62, %v4303_v59 }
 0xcb1   : > { %v4326_v4 = vpop.f32.mrb[23].mxu0 }
 0xcb2   : > { %v3751_v5 = vadd.f32 %v4324_v1, %v3710_v0  ;;  %v3713_v6 = vadd.f32 %v4305_v3, %v4206_v60  ;;  %v4327_v7 = vadd.f32 %v4326_v4, %v4325_v2  ;;  %3764 = sbr.rel (%p4239_p12) target bundleno = 3257 (0xcb9), region = 124 }
 0xcb4   : > { %v3757_v9 = vadd.f32 %v3751_v5, %v6167_v49  ;;  %v3754_v10 = vadd.f32 %v4327_v7, %v3713_v6 }
 0xcb6   : > { %3759 = vst [vmem:[#allocation2] sm:$0xff] %v3757_v9  ;;  %v3758_v11 = vadd.f32 %v3754_v10, %v6169_v45  ;;  %3765 = vst [vmem:[%s5831_s14] sm:$0xff] (!%p4239_p12), %v3757_v9 }
 0xcb8   : > { %3760 = vst [vmem:[#allocation2 + $0x8] sm:$0xff] %v3758_v11  ;;  %3766 = vst [vmem:[%s5831_s14 + $0x8] sm:$0xff] (!%p4239_p12), %v3758_v11 }
 0xcb9 PF: > { %s6557_s10 = sld [smem:[#allocation31_spill]]  ;;  %s6558_s6 = sld [smem:[#allocation44_spill]] }
 0xcba   : > { %s6559_s20 = sld [smem:[#allocation62_spill]]  ;;  %s3781_s16 = sshll.u32 %s5831_s14, 4  ;;  %s6326_s16 = int_to_ptr.vmem [resolvable:$true] %s3781_s16 }
 0xcbb   : > { %s3768_s8 = scalar_lea.sflag [#allocation5], %s5752_s3  ;;  %s5051_s29 = scalar_lea.vmem %s6326_s16, 256 }
 0xcbc   : > { %p5052_p8 = scmp.ne.s32.totalorder %s6326_s16, %s5051_s29  ;;  %s5217_s13 = smov [#allocation18]  }
 0xcbd   : > { %s5055_s22 = sshll.u32 %s5217_s13, 4  ;;  %s5056_s22 = int_to_ptr.vmem [resolvable:$false] %s5055_s22 }
 0xcbe   : > { %s5057_s23 = scalar_lea.vmem %s5056_s22, 512  ;;  %p5058_p5 = scmp.lt.s32.totalorder %s6326_s16, %s5056_s22 }
 0xcbf   : > { %s4249_s0 = sshll.u32 %s6557_s10, 8  ;;  %p6561_p9 = scmp.ne.s32.totalorder %s6558_s6, 0 }
 0xcc0   : > { %s6560_s2 = smov %s6559_s20  ;;  %s6323_s15 = scalar_lea.hbm %s6559_s20, %s4249_s0 }
 0xcc1   : > { %p5053_p1 = pnand %p5052_p8, %p6561_p9  ;;  %p5059_p11 = scmp.lt.s32.totalorder %s5057_s23, %s5051_s29 }
 0xcc3   : > { %p5054_p2 = pneg %p5053_p1  ;;  %p5060_p6 = por %p5059_p11, %p5058_p5 }
 0xcc5   : > { %p5061_p13 = pnand %p5060_p6, %p5054_p2 }
 0xcc7   : > { %5064 = shalt.err (!%p5061_p13)
}
 0xcc8   : > { %s5065_s14 = scalar_lea.hbm %s6323_s15, 256  ;;  %s5069_s28 = scalar_lea.hbm %s6560_s2, 512 }
 0xcc9   : > { %p5066_p7 = scmp.ne.s32.totalorder %s6323_s15, %s5065_s14  ;;  %p5070_p0 = scmp.lt.u32.totalorder %s6323_s15, %s6560_s2 }
 0xcca   : > { %p5071_p3 = scmp.lt.u32.totalorder %s5069_s28, %s5065_s14  ;;  %p5073_p8 = scmp.lt.u32.totalorder %s5065_s14, %s6323_s15 }
 0xccb   : > { %p5067_p10 = pnand %p5066_p7, %p6561_p9 }
 0xccc   : > { %p5072_p12 = por %p5071_p3, %p5070_p0 }
 0xccd   : > { %p5068_p4 = pneg %p5067_p10 }
 0xcce   : > { %p5074_p1 = por %p5073_p8, %p5072_p12 }
 0xcd0   : > { %p5075_p2 = pnand %p5074_p1, %p5068_p4 }
 0xcd2   : > { %5078 = shalt.err (!%p5075_p2)
}
 0xcd3   : > { %s5218_s11 = smov 128   ;;  %s5219_s9 = smov 8  }
 0xcd4   : > { %4442 = dma.vmem_to_hbm [thread:$0]  (%p6561_p9), %s6326_s16, 256, %s6323_s15, %s3768_s8, %s5218_s11, %s5218_s11, %s5219_s9  }
 0xcd5 PF: > { %s6562_s24 = sld [smem:[#allocation34_spill]]  ;;  %s6563_s17 = sld [smem:[#allocation27_spill]] }
 0xcd6   : > { %s6564_s18 = sld [smem:[#allocation37_spill]] }
 0xcdb   : > { %p4482_p5 = scmp.ge.s32.totalorder %s6562_s24, 2  ;;  %s3796_s1 = sand.u32 1, %s6563_s17  }
 0xcdc   : > { %p6565_p11 = scmp.ne.s32.totalorder %s6564_s18, 0  ;;  %s3797_s30 = scalar_lea.sflag [#allocation5], %s3796_s1 }
 0xcde   : > { %p4474_p6 = pnand %p4482_p5, %p6565_p11 }
 0xce0   : > { %5144 = dma.done.wait (!%p4474_p6), %s3797_s30, 256  }
 0xce1   : > { %5146 = vsyncadd (!%p4474_p6), %s3797_s30, 4294967040  ;;  %s41_s28 = sadd.s32 1, %s6562_s24   ;;  %s6566_s18 = sld [smem:[#allocation25_spill]] }
 0xce2   : > { %p38_p13 = scmp.ge.s32.totalorder %s41_s28, 6   ;;  %s6567_s19 = sld [smem:[#allocation26_spill]] }
 0xce3   : > { %s6568_s20 = sld [smem:[#allocation41_spill]]  ;;  %s6569_s21 = sld [smem:[#allocation28_spill]] }
 0xce4   : > { %s6570_s22 = sld [smem:[#allocation29_spill]]  ;;  %s6571_s23 = sld [smem:[#allocation46_spill]] }
 0xce5   : > { %s6572_s24 = sld [smem:[#allocation32_spill]]  ;;  %s6573_s25 = sld [smem:[#allocation33_spill]] }
 0xce6   : > { %s6574_s26 = sld [smem:[#allocation39_spill]]  ;;  %s6575_s27 = sld [smem:[#allocation45_spill]] }
 0xce7   :  { %40 = sbr.rel (!%p38_p13) target bundleno = 33 (0x21), region = 231 }
 0xcee   :  { %3802 = vsyncpa [#allocation4], 1 }
 0xcef   :  { %3804 = vsyncpa [#allocation4 + $0x1], 1 }
 0xcf0   :  { %3805 = vsyncpa [#allocation7], 1 }
 0xcf1   :  { %3806 = vsyncpa [#allocation10], 1 }
 0xcf2   :  { %3808 = vsyncpa [#allocation10 + $0x1], 1 }
 0xcf3   :  { %3809 = vsyncpa [#allocation13], 1 }
 0xcf4   :  { %3811 = vsyncpa [#allocation13 + $0x1], 1 }
 0xcf5   :  { %3812 = vsyncpa [#allocation16], 1 }
 0xcf6   :  { %3814 = vsyncpa [#allocation16 + $0x1], 1 }
 0xcf7   :  { %3815 = vsyncpa [#allocation5], 1 }
 0xcf8   :  { %3817 = vsyncpa [#allocation5 + $0x1], 1 }

</bundles_post_ra>
